<compile_context>
chip_gen: v7x
topology: tpu7x:2x2x1
jax: 0.10.0
libtpu: 0.0.40
codegen_flags: <defaults>
</compile_context>

<pallas_src>
import functools

import jax
import jax.numpy as jnp
from jax.experimental import pallas as pl
from jax.experimental.pallas import tpu as pltpu

_INV_SQRT2 = 0.7071067811865476


def _round_up(x, m):
    return (x + m - 1) // m * m


def _scoped_vmem_limit():
    cap = 64 * 1024 * 1024
    try:
        cap = int(getattr(pltpu.get_tpu_info(), "vmem_capacity_bytes", cap))
    except Exception:
        pass
    return min(cap - cap // 4, 100 * 1024 * 1024)


_VMEM_LIMIT = _scoped_vmem_limit()

# Generation-specific matmul tile preferences (bf16 activations):
#   * 128 MiB VMEM parts (v5e / v6e): large tiles to cut x / w re-read traffic.
#   * 64  MiB VMEM parts (v7x): MXU-friendly 256-multiples, smaller footprint.
if _VMEM_LIMIT >= 80 * 1024 * 1024:
    _MM_TM, _MM_TN, _MM_TK = 512, 1024, 1024
else:
    _MM_TM, _MM_TN, _MM_TK = 256, 512, 512


def _tile_and_pad(dim, pref, align):
    """Pick a tile size <= pref.  Prefer an exact divisor of `dim` that is a
    multiple of `align`; otherwise return `pref` and the zero-padded dim the
    caller must pad to (avoids the full-extent fallback that can blow VMEM at
    large, non-divisible dims)."""
    if dim <= pref:
        return dim, dim                      # single full-extent block (legal)
    t = (pref // align) * align
    while t >= align:
        if dim % t == 0:
            return t, dim
        t -= align
    t = (pref // align) * align
    return t, _round_up(dim, t)


def _pad2d(a, rows, cols):
    pr, pc = rows - a.shape[0], cols - a.shape[1]
    if pr or pc:
        a = jnp.pad(a, ((0, pr), (0, pc)))
    return a


# ----------------------------- Pallas kernels -----------------------------

def _matmul_kernel(*refs, act, has_res):
    """K-tiled matmul with f32 VMEM accumulator and fused bias / GELU /
    residual epilogue.  Grid = (M_tiles, N_tiles, K_tiles); K is reduction."""
    if has_res:
        x_ref, w_ref, b_ref, r_ref, o_ref, acc_ref = refs
    else:
        x_ref, w_ref, b_ref, o_ref, acc_ref = refs
        r_ref = None
    k = pl.program_id(2)

    @pl.when(k == 0)
    def _init():
        acc_ref[...] = jnp.zeros_like(acc_ref)

    acc_ref[...] += jnp.dot(x_ref[...].astype(w_ref.dtype), w_ref[...],
                            preferred_element_type=jnp.float32)

    @pl.when(k == pl.num_programs(2) - 1)
    def _finalize():
        y = acc_ref[...] + b_ref[...].astype(jnp.float32)
        if act == "gelu":
            y = 0.5 * y * (1.0 + jax.lax.erf(y * _INV_SQRT2))
        if r_ref is not None:
            y = y + r_ref[...].astype(jnp.float32)
        o_ref[...] = y.astype(o_ref.dtype)


def matmul(x, w, b, residual=None, act=None, out_dtype=jnp.bfloat16):
    """y = x @ w + b (+ GELU) (+ residual).  w bf16; output bf16 by default."""
    M, K = x.shape
    N = w.shape[1]
    tm, Mp = _tile_and_pad(M, _MM_TM, 8)
    tn, Np = _tile_and_pad(N, _MM_TN, 128)
    tk, Kp = _tile_and_pad(K, _MM_TK, 128)

    inputs = [_pad2d(x, Mp, Kp), _pad2d(w, Kp, Np),
              _pad2d(b.reshape(1, N), 1, Np)]
    in_specs = [
        pl.BlockSpec((tm, tk), lambda i, j, k: (i, k)),
        pl.BlockSpec((tk, tn), lambda i, j, k: (k, j)),
        pl.BlockSpec((1, tn), lambda i, j, k: (0, j)),
    ]
    if residual is not None:
        inputs.append(_pad2d(residual, Mp, Np))
        in_specs.append(pl.BlockSpec((tm, tn), lambda i, j, k: (i, j)))

    out = pl.pallas_call(
        functools.partial(_matmul_kernel, act=act, has_res=residual is not None),
        out_shape=jax.ShapeDtypeStruct((Mp, Np), out_dtype),
        grid=(Mp // tm, Np // tn, Kp // tk),
        in_specs=in_specs,
        out_specs=pl.BlockSpec((tm, tn), lambda i, j, k: (i, j)),
        scratch_shapes=[pltpu.VMEM((tm, tn), jnp.float32)],
        compiler_params=pltpu.CompilerParams(
            dimension_semantics=("parallel", "parallel", "arbitrary"),
            vmem_limit_bytes=_VMEM_LIMIT),
        cost_estimate=pl.CostEstimate(
            flops=2 * Mp * Np * Kp,
            transcendentals=(Mp * Np if act == "gelu" else 0),
            bytes_accessed=Mp * Kp * x.dtype.itemsize + Kp * Np * 2
                           + Mp * Np * 2
                           + (Mp * Np * 2 if residual is not None else 0)),
    )(*inputs)
    if Mp > M or Np > N:
        out = out[:M, :N]
    return out


def _ln_matmul_kernel(x_ref, g_ref, b_ref, w_ref, bias_ref, o_ref, xn_ref, *,
                      eps, act):
    """LayerNorm fused into the following matmul.  The normalized row tile is
    computed once (j == 0), cached in a bf16 VMEM scratch, and reused for all
    other N tiles (N grid axis is 'arbitrary' so its iterations stay on one
    core and run consecutively)."""
    @pl.when(pl.program_id(1) == 0)
    def _compute_ln():
        x = x_ref[...].astype(jnp.float32)
        mean = jnp.mean(x, axis=-1, keepdims=True)
        xc = x - mean
        var = jnp.mean(xc * xc, axis=-1, keepdims=True)   # two-pass: no cancellation
        xn = xc * jax.lax.rsqrt(var + eps)
        xn_ref[...] = (xn * g_ref[...] + b_ref[...]).astype(xn_ref.dtype)

    y = jnp.dot(xn_ref[...], w_ref[...], preferred_element_type=jnp.float32)
    y = y + bias_ref[...].astype(jnp.float32)
    if act == "gelu":
        y = 0.5 * y * (1.0 + jax.lax.erf(y * _INV_SQRT2))
    o_ref[...] = y.astype(o_ref.dtype)


def ln_matmul(x, g, beta, w, b, act=None, eps=1e-6, out_dtype=jnp.bfloat16):
    """y = LayerNorm(x) @ w + b (+ GELU).  Full feature dim K in one block."""
    M, K = x.shape
    N = w.shape[1]
    tm, Mp = _tile_and_pad(M, 256, 8)
    tn, Np = _tile_and_pad(N, _MM_TN, 128)

    out = pl.pallas_call(
        functools.partial(_ln_matmul_kernel, eps=eps, act=act),
        out_shape=jax.ShapeDtypeStruct((Mp, Np), out_dtype),
        grid=(Mp // tm, Np // tn),
        in_specs=[
            pl.BlockSpec((tm, K), lambda i, j: (i, 0)),
            pl.BlockSpec((1, K), lambda i, j: (0, 0)),
            pl.BlockSpec((1, K), lambda i, j: (0, 0)),
            pl.BlockSpec((K, tn), lambda i, j: (0, j)),
            pl.BlockSpec((1, tn), lambda i, j: (0, j)),
        ],
        out_specs=pl.BlockSpec((tm, tn), lambda i, j: (i, j)),
        scratch_shapes=[pltpu.VMEM((tm, K), jnp.bfloat16)],
        compiler_params=pltpu.CompilerParams(
            dimension_semantics=("parallel", "arbitrary"),
            vmem_limit_bytes=_VMEM_LIMIT),
        cost_estimate=pl.CostEstimate(
            flops=2 * Mp * Np * K + 8 * Mp * K,
            transcendentals=(Mp * Np if act == "gelu" else 0) + Mp,
            bytes_accessed=Mp * K * x.dtype.itemsize + K * Np * 2 + Mp * Np * 2),
    )(_pad2d(x, Mp, K), g.reshape(1, K), beta.reshape(1, K),
      _pad2d(w, K, Np), _pad2d(b.reshape(1, N), 1, Np))
    if Mp > M or Np > N:
        out = out[:M, :N]
    return out


def _attn_proj_kernel(qkv_ref, pw_ref, pb_ref, res_ref, o_ref, attn_ref, *,
                      num_heads, head_dim, seq_len):
    """Multi-head attention + output projection + residual for one batch
    element.  Q/K/V are static bf16 column slices of the fused [S_pad, 3E]
    block (never materialized in f32); the 1/sqrt(Dh) scale is already folded
    into the Q weights; per-head outputs are written into a bf16 VMEM scratch
    which then becomes the LHS of the projection matmul; one lane-dense
    [S_pad, E] store per batch."""
    E = num_heads * head_dim
    Sp = qkv_ref.shape[0]
    need_mask = seq_len < Sp
    if need_mask:
        kid = jax.lax.broadcasted_iota(jnp.int32, (1, Sp), 1)
        key_mask = jnp.where(kid < seq_len, 0.0, -1e30).astype(jnp.float32)

    for h in range(num_heads):
        lo = h * head_dim
        q = qkv_ref[:, lo:lo + head_dim]                     # bf16, pre-scaled
        k = qkv_ref[:, E + lo:E + lo + head_dim]             # bf16
        v = qkv_ref[:, 2 * E + lo:2 * E + lo + head_dim]     # bf16
        # Contraction on the last axis of both operands (q @ k^T without an
        # explicit transpose of k).
        # TODO(synk): verify with pl.lower_as_mlir that this does not lower to
        # a per-head XLU vxpose of k; if it does, pre-transpose K once per batch.
        s = jax.lax.dot_general(q, k, (((1,), (1,)), ((), ())),
                                preferred_element_type=jnp.float32)  # [Sp, Sp]
        if need_mask:
            s = s + key_mask
        m = jnp.max(s, axis=-1, keepdims=True)
        p = jnp.exp(s - m)
        l = jnp.sum(p, axis=-1, keepdims=True)
        o = jnp.dot(p.astype(jnp.bfloat16), v,
                    preferred_element_type=jnp.float32)              # [Sp, Dh]
        attn_ref[:, lo:lo + head_dim] = (
            o * pl.reciprocal(l, approx=True)).astype(attn_ref.dtype)

    y = jnp.dot(attn_ref[...], pw_ref[...], preferred_element_type=jnp.float32)
    y = y + pb_ref[...].astype(jnp.float32) + res_ref[...].astype(jnp.float32)
    o_ref[...] = y.astype(o_ref.dtype)


def attention_proj(qkv, proj_w, proj_b, residual, B, S_pad, seq_len, num_heads):
    """qkv [B*S_pad, 3E] -> residual + (MHA(qkv) @ proj_w + proj_b), bf16."""
    threeE = qkv.shape[1]
    E = threeE // 3
    Dh = E // num_heads
    return pl.pallas_call(
        functools.partial(_attn_proj_kernel, num_heads=num_heads, head_dim=Dh,
                          seq_len=seq_len),
        out_shape=jax.ShapeDtypeStruct((B * S_pad, E), jnp.bfloat16),
        grid=(B,),
        in_specs=[
            pl.BlockSpec((S_pad, threeE), lambda b: (b, 0)),
            pl.BlockSpec((E, E), lambda b: (0, 0)),
            pl.BlockSpec((1, E), lambda b: (0, 0)),
            pl.BlockSpec((S_pad, E), lambda b: (b, 0)),
        ],
        out_specs=pl.BlockSpec((S_pad, E), lambda b: (b, 0)),
        scratch_shapes=[pltpu.VMEM((S_pad, E), jnp.bfloat16)],
        compiler_params=pltpu.CompilerParams(
            dimension_semantics=("parallel",),
            vmem_limit_bytes=_VMEM_LIMIT),
        cost_estimate=pl.CostEstimate(
            flops=4 * B * num_heads * S_pad * S_pad * Dh
                  + 2 * B * S_pad * E * E,
            transcendentals=B * num_heads * S_pad * S_pad,
            bytes_accessed=(B * S_pad * threeE + E * E + 2 * B * S_pad * E) * 2),
    )(qkv, proj_w, proj_b.reshape(1, E), residual)


# ----------------------------- parameter init -----------------------------

def _trunc_normal(key, shape, std):
    return (std * jax.random.truncated_normal(key, -2.0, 2.0, shape)).astype(jnp.float32)


def init_params(key, *, in_c, patch_size, embed_dim, depth, num_heads,
                mlp_ratio, num_classes, num_patches):
    hidden = int(embed_dim * mlp_ratio)
    head_dim = embed_dim // num_heads
    keys = iter(jax.random.split(key, 8 + depth * 4))
    params = {}

    # patch embed: Conv2d(in_c, embed_dim, k=p, s=p), kaiming_normal_(fan_out)
    fan_out = embed_dim * patch_size * patch_size
    conv_w = (jnp.sqrt(2.0 / fan_out)
              * jax.random.normal(next(keys), (embed_dim, in_c, patch_size, patch_size))
              ).astype(jnp.float32)
    params["patch_w"] = conv_w.reshape(
        embed_dim, in_c * patch_size * patch_size).T.astype(jnp.bfloat16)  # [C*p*p, E]
    params["patch_b"] = jnp.zeros((embed_dim,), jnp.float32)

    params["cls_token"] = _trunc_normal(next(keys), (1, 1, embed_dim), 0.02)
    params["pos_embed"] = _trunc_normal(next(keys), (1, num_patches + 1, embed_dim), 0.02)

    # 1/sqrt(Dh) is folded into the Q columns of the QKV weight so the
    # attention kernel never multiplies Q by the scale (qkv bias is zero, so
    # no bias scaling is needed).
    q_scale = jnp.concatenate([
        jnp.full((embed_dim,), head_dim ** -0.5, jnp.float32),
        jnp.ones((2 * embed_dim,), jnp.float32)])

    blocks = []
    for _ in range(depth):
        bk = jax.random.split(next(keys), 4)
        blocks.append({
            "ln1_g": jnp.ones((embed_dim,), jnp.float32),
            "ln1_b": jnp.zeros((embed_dim,), jnp.float32),
            "qkv_w": (_trunc_normal(bk[0], (embed_dim, 3 * embed_dim), 0.01)
                      * q_scale).astype(jnp.bfloat16),
            "qkv_b": jnp.zeros((3 * embed_dim,), jnp.float32),
            "proj_w": _trunc_normal(bk[1], (embed_dim, embed_dim), 0.01).astype(jnp.bfloat16),
            "proj_b": jnp.zeros((embed_dim,), jnp.float32),
            "ln2_g": jnp.ones((embed_dim,), jnp.float32),
            "ln2_b": jnp.zeros((embed_dim,), jnp.float32),
            "fc1_w": _trunc_normal(bk[2], (embed_dim, hidden), 0.01).astype(jnp.bfloat16),
            "fc1_b": jnp.zeros((hidden,), jnp.float32),
            "fc2_w": _trunc_normal(bk[3], (hidden, embed_dim), 0.01).astype(jnp.bfloat16),
            "fc2_b": jnp.zeros((embed_dim,), jnp.float32),
        })
    params["blocks"] = blocks

    params["norm_g"] = jnp.ones((embed_dim,), jnp.float32)
    params["norm_b"] = jnp.zeros((embed_dim,), jnp.float32)

    # representation_size=None -> pre_logits = Identity; head: Linear(E, classes)
    params["head_w"] = _trunc_normal(next(keys), (embed_dim, num_classes), 0.01).astype(jnp.bfloat16)
    params["head_b"] = jnp.zeros((num_classes,), jnp.float32)
    return params


# ------------------------------ forward pass ------------------------------

def _block_forward(bp, x2d, B, S_pad, S, num_heads):
    # x = x + proj(Attn(LN1(x)))    (attn_drop / proj_drop / drop_path = identity)
    qkv = ln_matmul(x2d, bp["ln1_g"], bp["ln1_b"], bp["qkv_w"], bp["qkv_b"])   # bf16 [B*Sp, 3E]
    x2d = attention_proj(qkv, bp["proj_w"], bp["proj_b"], x2d,
                         B, S_pad, S, num_heads)                               # bf16 [B*Sp, E]
    # x = x + fc2(GELU(fc1(LN2(x))))
    h = ln_matmul(x2d, bp["ln2_g"], bp["ln2_b"], bp["fc1_w"], bp["fc1_b"], act="gelu")
    x2d = matmul(h, bp["fc2_w"], bp["fc2_b"], residual=x2d)
    return x2d


def vit_forward(params, x, *, patch_size, num_heads):
    B, C, H, W = x.shape
    p = patch_size
    Hp, Wp = H // p, W // p
    Np = Hp * Wp
    E = params["patch_b"].shape[0]
    S = Np + 1
    S_pad = _round_up(S, 8)          # pad sequence so row tiles are (8,128)-friendly

    # patch embedding (Conv2d k=p, s=p == patch flatten + matmul), channel-major
    # within a patch to match the Conv2d weight layout [E, C, p, p].
    # TODO(synk): the cls/pos-embed concat+add and the 6-D patch transpose stay
    # in plain XLA; folding them into the patch-embed matmul epilogue would
    # save one more activation round trip.
    patches = (x.reshape(B, C, Hp, p, Wp, p)
                 .transpose(0, 2, 4, 1, 3, 5)          # [B, Hp, Wp, C, p, p]
                 .reshape(B * Np, C * p * p))
    tokens = matmul(patches, params["patch_w"], params["patch_b"]).reshape(B, Np, E)

    # cls token + positional embedding (pos_drop has p=0 -> identity)
    cls = jnp.broadcast_to(params["cls_token"], (B, 1, E)).astype(jnp.float32)
    xs = jnp.concatenate([cls, tokens.astype(jnp.float32)], axis=1) + params["pos_embed"]
    xs = xs.astype(jnp.bfloat16)                       # bf16 residual stream
    if S_pad > S:
        xs = jnp.concatenate([xs, jnp.zeros((B, S_pad - S, E), xs.dtype)], axis=1)
    x2d = xs.reshape(B * S_pad, E)

    for bp in params["blocks"]:
        x2d = _block_forward(bp, x2d, B, S_pad, S, num_heads)

    # final norm + head, fused (LN is row-wise so LN(x)[:, 0] == LN(x[:, 0]));
    # pre_logits = Identity (representation_size=None, distilled=False)
    cls_out = x2d.reshape(B, S_pad, E)[:, 0]           # [B, E] bf16
    logits = ln_matmul(cls_out, params["norm_g"], params["norm_b"],
                       params["head_w"], params["head_b"], out_dtype=jnp.float32)
    return logits


# ---------------------------------- main ----------------------------------

if __name__ == "__main__":
    # small ViT: img 16x16, patch 4, in_c 3, embed 32, depth 2, heads 4, classes 10
    B, C, IMG, P = 2, 3, 16, 4
    EMBED, DEPTH, HEADS, MLP_RATIO, NUM_CLASSES = 32, 2, 4, 4.0, 10
    NUM_PATCHES = (IMG // P) ** 2

    key = jax.random.PRNGKey(0)
    k_in, k_param = jax.random.split(key)
    x = jax.random.normal(k_in, (B, C, IMG, IMG), dtype=jnp.float32)

    params = init_params(
        k_param, in_c=C, patch_size=P, embed_dim=EMBED, depth=DEPTH,
        num_heads=HEADS, mlp_ratio=MLP_RATIO, num_classes=NUM_CLASSES,
        num_patches=NUM_PATCHES)

    fwd = jax.jit(functools.partial(vit_forward, patch_size=P, num_heads=HEADS))
    out = fwd(params, x)
    jax.block_until_ready(out)
    assert out.shape == (B, NUM_CLASSES)
    assert bool(jnp.all(jnp.isfinite(out)))
    # TODO(synk): dropout / drop_path are identity (p=0.0) and are omitted.
    print("KERNEL_OK")
</pallas_src>

<mosaic_0001>
module attributes {stable_mosaic.version = 11 : i64} {
  func.func @_ln_matmul_kernel(%arg0: i32, %arg1: i32, %arg2: memref<48x32xbf16, #tpu.memory_space<vmem>>, %arg3: memref<1x32xf32, #tpu.memory_space<vmem>>, %arg4: memref<1x32xf32, #tpu.memory_space<vmem>>, %arg5: memref<32x96xbf16, #tpu.memory_space<vmem>>, %arg6: memref<1x96xf32, #tpu.memory_space<vmem>>, %arg7: memref<48x96xbf16, #tpu.memory_space<vmem>>, %arg8: memref<48x32xbf16, #tpu.memory_space<vmem>>) attributes {dimension_semantics = [#tpu.dimension_semantics<parallel>, #tpu.dimension_semantics<arbitrary>], iteration_bounds = array<i64: 1, 1>, scalar_prefetch = 0 : i64, scratch_operands = 1 : i64, tpu.core_type = #tpu.core_type<tc>, window_params = [{transform_indices = @transform_0, window_bounds = array<i64: 48, 32>}, {pipeline_mode = #tpu.pipeline_mode<synchronous>, transform_indices = @transform_1, window_bounds = array<i64: 1, 32>}, {pipeline_mode = #tpu.pipeline_mode<synchronous>, transform_indices = @transform_2, window_bounds = array<i64: 1, 32>}, {transform_indices = @transform_3, window_bounds = array<i64: 32, 96>}, {transform_indices = @transform_4, window_bounds = array<i64: 1, 96>}, {transform_indices = @transform_5, window_bounds = array<i64: 48, 96>}]} {
    %c0_i32 = arith.constant 0 : i32
    %0 = arith.cmpi eq, %arg1, %c0_i32 : i32
    %1 = arith.extui %0 : i1 to i32
    %c0_i32_0 = arith.constant 0 : i32
    %2 = arith.cmpi ne, %1, %c0_i32_0 : i32
    scf.if %2 {
      %c0_8 = arith.constant 0 : index
      %c0_9 = arith.constant 0 : index
      %11 = vector.load %arg2[%c0_8, %c0_9] : memref<48x32xbf16, #tpu.memory_space<vmem>>, vector<48x32xbf16>
      %12 = arith.extf %11 : vector<48x32xbf16> to vector<48x32xf32>
      %cst_10 = arith.constant dense<0.000000e+00> : vector<48xf32>
      %13 = vector.multi_reduction <add>, %12, %cst_10 [1] : vector<48x32xf32> to vector<48xf32>
      %14 = vector.shape_cast %13 : vector<48xf32> to vector<48x1xf32>
      %cst_11 = arith.constant 3.200000e+01 : f32
      %15 = vector.broadcast %cst_11 : f32 to vector<48x1xf32>
      %16 = arith.divf %14, %15 : vector<48x1xf32>
      %17 = vector.broadcast %16 : vector<48x1xf32> to vector<48x32xf32>
      %18 = arith.subf %12, %17 : vector<48x32xf32>
      %19 = arith.mulf %18, %18 : vector<48x32xf32>
      %cst_12 = arith.constant dense<0.000000e+00> : vector<48xf32>
      %20 = vector.multi_reduction <add>, %19, %cst_12 [1] : vector<48x32xf32> to vector<48xf32>
      %21 = vector.shape_cast %20 : vector<48xf32> to vector<48x1xf32>
      %cst_13 = arith.constant 3.200000e+01 : f32
      %22 = vector.broadcast %cst_13 : f32 to vector<48x1xf32>
      %23 = arith.divf %21, %22 : vector<48x1xf32>
      %cst_14 = arith.constant 9.99999997E-7 : f32
      %24 = vector.broadcast %cst_14 : f32 to vector<48x1xf32>
      %25 = arith.addf %23, %24 : vector<48x1xf32>
      %26 = math.rsqrt %25 : vector<48x1xf32>
      %27 = vector.broadcast %26 : vector<48x1xf32> to vector<48x32xf32>
      %28 = arith.mulf %18, %27 : vector<48x32xf32>
      %c0_15 = arith.constant 0 : index
      %c0_16 = arith.constant 0 : index
      %29 = vector.load %arg3[%c0_15, %c0_16] : memref<1x32xf32, #tpu.memory_space<vmem>>, vector<1x32xf32>
      %30 = vector.broadcast %29 : vector<1x32xf32> to vector<48x32xf32>
      %31 = arith.mulf %28, %30 : vector<48x32xf32>
      %c0_17 = arith.constant 0 : index
      %c0_18 = arith.constant 0 : index
      %32 = vector.load %arg4[%c0_17, %c0_18] : memref<1x32xf32, #tpu.memory_space<vmem>>, vector<1x32xf32>
      %33 = vector.broadcast %32 : vector<1x32xf32> to vector<48x32xf32>
      %34 = arith.addf %31, %33 : vector<48x32xf32>
      %35 = arith.truncf %34 : vector<48x32xf32> to vector<48x32xbf16>
      %c0_19 = arith.constant 0 : index
      %c0_20 = arith.constant 0 : index
      %36 = vector.load %arg8[%c0_19, %c0_20] : memref<48x32xbf16, #tpu.memory_space<vmem>>, vector<48x32xbf16>
      tpu.vector_store %arg8[%c0_19, %c0_20], %35 {strides = array<i32>} : memref<48x32xbf16, #tpu.memory_space<vmem>>, vector<48x32xbf16>,
    } else {
    }
    %c0 = arith.constant 0 : index
    %c0_1 = arith.constant 0 : index
    %3 = vector.load %arg8[%c0, %c0_1] : memref<48x32xbf16, #tpu.memory_space<vmem>>, vector<48x32xbf16>
    %c0_2 = arith.constant 0 : index
    %c0_3 = arith.constant 0 : index
    %4 = vector.load %arg5[%c0_2, %c0_3] : memref<32x96xbf16, #tpu.memory_space<vmem>>, vector<32x96xbf16>
    %cst = arith.constant dense<0.000000e+00> : vector<48x96xf32>
    %5 = tpu.matmul %3, %4, %cst {dimension_numbers = #tpu.dot_dimension_numbers<[1], [0], [0], [1], [0, 0, 1, 1], [], []>} : vector<48x32xbf16>, vector<32x96xbf16>, vector<48x96xf32> -> vector<48x96xf32>
    %c0_4 = arith.constant 0 : index
    %c0_5 = arith.constant 0 : index
    %6 = vector.load %arg6[%c0_4, %c0_5] : memref<1x96xf32, #tpu.memory_space<vmem>>, vector<1x96xf32>
    %7 = vector.broadcast %6 : vector<1x96xf32> to vector<48x96xf32>
    %8 = arith.addf %5, %7 : vector<48x96xf32>
    %9 = arith.truncf %8 : vector<48x96xf32> to vector<48x96xbf16>
    %c0_6 = arith.constant 0 : index
    %c0_7 = arith.constant 0 : index
    %10 = vector.load %arg7[%c0_6, %c0_7] : memref<48x96xbf16, #tpu.memory_space<vmem>>, vector<48x96xbf16>
    tpu.vector_store %arg7[%c0_6, %c0_7], %9 {strides = array<i32>} : memref<48x96xbf16, #tpu.memory_space<vmem>>, vector<48x96xbf16>,
    return
  }
  func.func @transform_0(%arg0: i32, %arg1: i32) -> (i32, i32) {
    %c0_i32 = arith.constant 0 : i32
    %c0_i32_0 = arith.constant 0 : i32
    return %arg0, %c0_i32 : i32, i32
  }
  func.func @transform_1(%arg0: i32, %arg1: i32) -> (i32, i32) {
    %c0_i32 = arith.constant 0 : i32
    %c0_i32_0 = arith.constant 0 : i32
    %c0_i32_1 = arith.constant 0 : i32
    return %c0_i32, %c0_i32_0 : i32, i32
  }
  func.func @transform_2(%arg0: i32, %arg1: i32) -> (i32, i32) {
    %c0_i32 = arith.constant 0 : i32
    %c0_i32_0 = arith.constant 0 : i32
    %c0_i32_1 = arith.constant 0 : i32
    return %c0_i32, %c0_i32_0 : i32, i32
  }
  func.func @transform_3(%arg0: i32, %arg1: i32) -> (i32, i32) {
    %c0_i32 = arith.constant 0 : i32
    %c0_i32_0 = arith.constant 0 : i32
    return %c0_i32, %arg1 : i32, i32
  }
  func.func @transform_4(%arg0: i32, %arg1: i32) -> (i32, i32) {
    %c0_i32 = arith.constant 0 : i32
    %c0_i32_0 = arith.constant 0 : i32
    return %c0_i32, %arg1 : i32, i32
  }
  func.func @transform_5(%arg0: i32, %arg1: i32) -> (i32, i32) {
    %c0_i32 = arith.constant 0 : i32
    return %arg0, %arg1 : i32, i32
  }
}

module attributes {stable_mosaic.version = 11 : i64} {
  func.func @_matmul_kernel(%arg0: i32, %arg1: i32, %arg2: i32, %arg3: memref<32x48xf32, #tpu.memory_space<vmem>>, %arg4: memref<48x32xbf16, #tpu.memory_space<vmem>>, %arg5: memref<1x32xf32, #tpu.memory_space<vmem>>, %arg6: memref<32x32xbf16, #tpu.memory_space<vmem>>, %arg7: memref<32x32xf32, #tpu.memory_space<vmem>>) attributes {dimension_semantics = [#tpu.dimension_semantics<parallel>, #tpu.dimension_semantics<parallel>, #tpu.dimension_semantics<arbitrary>], iteration_bounds = array<i64: 1, 1, 1>, scalar_prefetch = 0 : i64, scratch_operands = 1 : i64, tpu.core_type = #tpu.core_type<tc>, window_params = [{transform_indices = @transform_0, window_bounds = array<i64: 32, 48>}, {transform_indices = @transform_1, window_bounds = array<i64: 48, 32>}, {transform_indices = @transform_2, window_bounds = array<i64: 1, 32>}, {transform_indices = @transform_3, window_bounds = array<i64: 32, 32>}]} {
    %c0_i32 = arith.constant 0 : i32
    %0 = arith.cmpi eq, %arg2, %c0_i32 : i32
    %1 = arith.extui %0 : i1 to i32
    %c0_i32_0 = arith.constant 0 : i32
    %2 = arith.cmpi ne, %1, %c0_i32_0 : i32
    scf.if %2 {
      %cst_10 = arith.constant 0.000000e+00 : f32
      %13 = vector.broadcast %cst_10 : f32 to vector<32x32xf32>
      %c0_11 = arith.constant 0 : index
      %c0_12 = arith.constant 0 : index
      %14 = vector.load %arg7[%c0_11, %c0_12] : memref<32x32xf32, #tpu.memory_space<vmem>>, vector<32x32xf32>
      tpu.vector_store %arg7[%c0_11, %c0_12], %13 {strides = array<i32>} : memref<32x32xf32, #tpu.memory_space<vmem>>, vector<32x32xf32>,
    } else {
    }
    %c0 = arith.constant 0 : index
    %c0_1 = arith.constant 0 : index
    %3 = vector.load %arg7[%c0, %c0_1] : memref<32x32xf32, #tpu.memory_space<vmem>>, vector<32x32xf32>
    %c0_2 = arith.constant 0 : index
    %c0_3 = arith.constant 0 : index
    %4 = vector.load %arg3[%c0_2, %c0_3] : memref<32x48xf32, #tpu.memory_space<vmem>>, vector<32x48xf32>
    %5 = arith.truncf %4 : vector<32x48xf32> to vector<32x48xbf16>
    %c0_4 = arith.constant 0 : index
    %c0_5 = arith.constant 0 : index
    %6 = vector.load %arg4[%c0_4, %c0_5] : memref<48x32xbf16, #tpu.memory_space<vmem>>, vector<48x32xbf16>
    %cst = arith.constant dense<0.000000e+00> : vector<32x32xf32>
    %7 = tpu.matmul %5, %6, %cst {dimension_numbers = #tpu.dot_dimension_numbers<[1], [0], [0], [1], [0, 0, 1, 1], [], []>} : vector<32x48xbf16>, vector<48x32xbf16>, vector<32x32xf32> -> vector<32x32xf32>
    %8 = arith.addf %3, %7 : vector<32x32xf32>
    %c0_6 = arith.constant 0 : index
    %c0_7 = arith.constant 0 : index
    %9 = vector.load %arg7[%c0_6, %c0_7] : memref<32x32xf32, #tpu.memory_space<vmem>>, vector<32x32xf32>
    tpu.vector_store %arg7[%c0_6, %c0_7], %8 {strides = array<i32>} : memref<32x32xf32, #tpu.memory_space<vmem>>, vector<32x32xf32>,
    %c0_i32_8 = arith.constant 0 : i32
    %10 = arith.cmpi eq, %arg2, %c0_i32_8 : i32
    %11 = arith.extui %10 : i1 to i32
    %c0_i32_9 = arith.constant 0 : i32
    %12 = arith.cmpi ne, %11, %c0_i32_9 : i32
    scf.if %12 {
      %c0_10 = arith.constant 0 : index
      %c0_11 = arith.constant 0 : index
      %13 = vector.load %arg7[%c0_10, %c0_11] : memref<32x32xf32, #tpu.memory_space<vmem>>, vector<32x32xf32>
      %c0_12 = arith.constant 0 : index
      %c0_13 = arith.constant 0 : index
      %14 = vector.load %arg5[%c0_12, %c0_13] : memref<1x32xf32, #tpu.memory_space<vmem>>, vector<1x32xf32>
      %15 = vector.broadcast %14 : vector<1x32xf32> to vector<32x32xf32>
      %16 = arith.addf %13, %15 : vector<32x32xf32>
      %17 = arith.truncf %16 : vector<32x32xf32> to vector<32x32xbf16>
      %c0_14 = arith.constant 0 : index
      %c0_15 = arith.constant 0 : index
      %18 = vector.load %arg6[%c0_14, %c0_15] : memref<32x32xbf16, #tpu.memory_space<vmem>>, vector<32x32xbf16>
      tpu.vector_store %arg6[%c0_14, %c0_15], %17 {strides = array<i32>} : memref<32x32xbf16, #tpu.memory_space<vmem>>, vector<32x32xbf16>,
    } else {
    }
    return
  }
  func.func @transform_0(%arg0: i32, %arg1: i32, %arg2: i32) -> (i32, i32) {
    %c0_i32 = arith.constant 0 : i32
    return %arg0, %arg2 : i32, i32
  }
  func.func @transform_1(%arg0: i32, %arg1: i32, %arg2: i32) -> (i32, i32) {
    %c0_i32 = arith.constant 0 : i32
    return %arg2, %arg1 : i32, i32
  }
  func.func @transform_2(%arg0: i32, %arg1: i32, %arg2: i32) -> (i32, i32) {
    %c0_i32 = arith.constant 0 : i32
    %c0_i32_0 = arith.constant 0 : i32
    return %c0_i32, %arg1 : i32, i32
  }
  func.func @transform_3(%arg0: i32, %arg1: i32, %arg2: i32) -> (i32, i32) {
    %c0_i32 = arith.constant 0 : i32
    return %arg0, %arg1 : i32, i32
  }
}

module attributes {stable_mosaic.version = 11 : i64} {
  func.func @_attn_proj_kernel(%arg0: i32, %arg1: memref<24x96xbf16, #tpu.memory_space<vmem>>, %arg2: memref<32x32xbf16, #tpu.memory_space<vmem>>, %arg3: memref<1x32xf32, #tpu.memory_space<vmem>>, %arg4: memref<24x32xbf16, #tpu.memory_space<vmem>>, %arg5: memref<24x32xbf16, #tpu.memory_space<vmem>>, %arg6: memref<24x32xbf16, #tpu.memory_space<vmem>>) attributes {dimension_semantics = [#tpu.dimension_semantics<parallel>], iteration_bounds = array<i64: 2>, scalar_prefetch = 0 : i64, scratch_operands = 1 : i64, tpu.core_type = #tpu.core_type<tc>, window_params = [{transform_indices = @transform_0, window_bounds = array<i64: 24, 96>}, {pipeline_mode = #tpu.pipeline_mode<synchronous>, transform_indices = @transform_1, window_bounds = array<i64: 32, 32>}, {pipeline_mode = #tpu.pipeline_mode<synchronous>, transform_indices = @transform_2, window_bounds = array<i64: 1, 32>}, {transform_indices = @transform_3, window_bounds = array<i64: 24, 32>}, {transform_indices = @transform_4, window_bounds = array<i64: 24, 32>}]} {
    %0 = tpu.iota {dimensions = array<i32: 1>} : vector<1x24xi32>
    %c17_i32 = arith.constant 17 : i32
    %1 = vector.broadcast %c17_i32 : i32 to vector<1x24xi32>
    %2 = arith.cmpi slt, %0, %1 : vector<1x24xi32>
    %cst = arith.constant 0.000000e+00 : f32
    %cst_0 = arith.constant -1.000000e+30 : f32
    %3 = vector.broadcast %cst : f32 to vector<1x24xf32>
    %4 = vector.broadcast %cst_0 : f32 to vector<1x24xf32>
    %5 = arith.select %2, %3, %4 : vector<1x24xi1>, vector<1x24xf32>
    %c0 = arith.constant 0 : index
    %c0_1 = arith.constant 0 : index
    %6 = vector.load %arg1[%c0, %c0_1] : memref<24x96xbf16, #tpu.memory_space<vmem>>, vector<24x8xbf16>
    %c0_2 = arith.constant 0 : index
    %c32 = arith.constant 32 : index
    %7 = vector.load %arg1[%c0_2, %c32] : memref<24x96xbf16, #tpu.memory_space<vmem>>, vector<24x8xbf16>
    %c0_3 = arith.constant 0 : index
    %c64 = arith.constant 64 : index
    %8 = vector.load %arg1[%c0_3, %c64] : memref<24x96xbf16, #tpu.memory_space<vmem>>, vector<24x8xbf16>
    %cst_4 = arith.constant dense<0.000000e+00> : vector<24x24xf32>
    %9 = tpu.matmul %6, %7, %cst_4 {dimension_numbers = #tpu.dot_dimension_numbers<[1], [1], [0], [0], [0, 0, 1, 0], [], []>} : vector<24x8xbf16>, vector<24x8xbf16>, vector<24x24xf32> -> vector<24x24xf32>
    %10 = vector.broadcast %5 : vector<1x24xf32> to vector<24x24xf32>
    %11 = arith.addf %9, %10 : vector<24x24xf32>
    %cst_5 = arith.constant dense<0xFF800000> : vector<24xf32>
    %12 = vector.multi_reduction <maximumf>, %11, %cst_5 [1] : vector<24x24xf32> to vector<24xf32>
    %13 = vector.shape_cast %12 : vector<24xf32> to vector<24x1xf32>
    %14 = vector.broadcast %13 : vector<24x1xf32> to vector<24x24xf32>
    %15 = arith.subf %11, %14 : vector<24x24xf32>
    %16 = math.exp %15 : vector<24x24xf32>
    %cst_6 = arith.constant dense<0.000000e+00> : vector<24xf32>
    %17 = vector.multi_reduction <add>, %16, %cst_6 [1] : vector<24x24xf32> to vector<24xf32>
    %18 = vector.shape_cast %17 : vector<24xf32> to vector<24x1xf32>
    %19 = arith.truncf %16 : vector<24x24xf32> to vector<24x24xbf16>
    %cst_7 = arith.constant dense<0.000000e+00> : vector<24x8xf32>
    %20 = tpu.matmul %19, %8, %cst_7 {dimension_numbers = #tpu.dot_dimension_numbers<[1], [0], [0], [1], [0, 0, 1, 1], [], []>} : vector<24x24xbf16>, vector<24x8xbf16>, vector<24x8xf32> -> vector<24x8xf32>
    %21 = tpu.reciprocal %18 {approx = true} : vector<24x1xf32> -> vector<24x1xf32>
    %22 = vector.broadcast %21 : vector<24x1xf32> to vector<24x8xf32>
    %23 = arith.mulf %20, %22 : vector<24x8xf32>
    %24 = arith.truncf %23 : vector<24x8xf32> to vector<24x8xbf16>
    %c0_8 = arith.constant 0 : index
    %c0_9 = arith.constant 0 : index
    %25 = vector.load %arg6[%c0_8, %c0_9] : memref<24x32xbf16, #tpu.memory_space<vmem>>, vector<24x8xbf16>
    tpu.vector_store %arg6[%c0_8, %c0_9], %24 {strides = array<i32>} : memref<24x32xbf16, #tpu.memory_space<vmem>>, vector<24x8xbf16>,
    %c0_10 = arith.constant 0 : index
    %c8 = arith.constant 8 : index
    %26 = vector.load %arg1[%c0_10, %c8] : memref<24x96xbf16, #tpu.memory_space<vmem>>, vector<24x8xbf16>
    %c0_11 = arith.constant 0 : index
    %c40 = arith.constant 40 : index
    %27 = vector.load %arg1[%c0_11, %c40] : memref<24x96xbf16, #tpu.memory_space<vmem>>, vector<24x8xbf16>
    %c0_12 = arith.constant 0 : index
    %c72 = arith.constant 72 : index
    %28 = vector.load %arg1[%c0_12, %c72] : memref<24x96xbf16, #tpu.memory_space<vmem>>, vector<24x8xbf16>
    %cst_13 = arith.constant dense<0.000000e+00> : vector<24x24xf32>
    %29 = tpu.matmul %26, %27, %cst_13 {dimension_numbers = #tpu.dot_dimension_numbers<[1], [1], [0], [0], [0, 0, 1, 0], [], []>} : vector<24x8xbf16>, vector<24x8xbf16>, vector<24x24xf32> -> vector<24x24xf32>
    %30 = vector.broadcast %5 : vector<1x24xf32> to vector<24x24xf32>
    %31 = arith.addf %29, %30 : vector<24x24xf32>
    %cst_14 = arith.constant dense<0xFF800000> : vector<24xf32>
    %32 = vector.multi_reduction <maximumf>, %31, %cst_14 [1] : vector<24x24xf32> to vector<24xf32>
    %33 = vector.shape_cast %32 : vector<24xf32> to vector<24x1xf32>
    %34 = vector.broadcast %33 : vector<24x1xf32> to vector<24x24xf32>
    %35 = arith.subf %31, %34 : vector<24x24xf32>
    %36 = math.exp %35 : vector<24x24xf32>
    %cst_15 = arith.constant dense<0.000000e+00> : vector<24xf32>
    %37 = vector.multi_reduction <add>, %36, %cst_15 [1] : vector<24x24xf32> to vector<24xf32>
    %38 = vector.shape_cast %37 : vector<24xf32> to vector<24x1xf32>
    %39 = arith.truncf %36 : vector<24x24xf32> to vector<24x24xbf16>
    %cst_16 = arith.constant dense<0.000000e+00> : vector<24x8xf32>
    %40 = tpu.matmul %39, %28, %cst_16 {dimension_numbers = #tpu.dot_dimension_numbers<[1], [0], [0], [1], [0, 0, 1, 1], [], []>} : vector<24x24xbf16>, vector<24x8xbf16>, vector<24x8xf32> -> vector<24x8xf32>
    %41 = tpu.reciprocal %38 {approx = true} : vector<24x1xf32> -> vector<24x1xf32>
    %42 = vector.broadcast %41 : vector<24x1xf32> to vector<24x8xf32>
    %43 = arith.mulf %40, %42 : vector<24x8xf32>
    %44 = arith.truncf %43 : vector<24x8xf32> to vector<24x8xbf16>
    %c0_17 = arith.constant 0 : index
    %c8_18 = arith.constant 8 : index
    %45 = vector.load %arg6[%c0_17, %c8_18] : memref<24x32xbf16, #tpu.memory_space<vmem>>, vector<24x8xbf16>
    tpu.vector_store %arg6[%c0_17, %c8_18], %44 {strides = array<i32>} : memref<24x32xbf16, #tpu.memory_space<vmem>>, vector<24x8xbf16>,
    %c0_19 = arith.constant 0 : index
    %c16 = arith.constant 16 : index
    %46 = vector.load %arg1[%c0_19, %c16] : memref<24x96xbf16, #tpu.memory_space<vmem>>, vector<24x8xbf16>
    %c0_20 = arith.constant 0 : index
    %c48 = arith.constant 48 : index
    %47 = vector.load %arg1[%c0_20, %c48] : memref<24x96xbf16, #tpu.memory_space<vmem>>, vector<24x8xbf16>
    %c0_21 = arith.constant 0 : index
    %c80 = arith.constant 80 : index
    %48 = vector.load %arg1[%c0_21, %c80] : memref<24x96xbf16, #tpu.memory_space<vmem>>, vector<24x8xbf16>
    %cst_22 = arith.constant dense<0.000000e+00> : vector<24x24xf32>
    %49 = tpu.matmul %46, %47, %cst_22 {dimension_numbers = #tpu.dot_dimension_numbers<[1], [1], [0], [0], [0, 0, 1, 0], [], []>} : vector<24x8xbf16>, vector<24x8xbf16>, vector<24x24xf32> -> vector<24x24xf32>
    %50 = vector.broadcast %5 : vector<1x24xf32> to vector<24x24xf32>
    %51 = arith.addf %49, %50 : vector<24x24xf32>
    %cst_23 = arith.constant dense<0xFF800000> : vector<24xf32>
    %52 = vector.multi_reduction <maximumf>, %51, %cst_23 [1] : vector<24x24xf32> to vector<24xf32>
    %53 = vector.shape_cast %52 : vector<24xf32> to vector<24x1xf32>
    %54 = vector.broadcast %53 : vector<24x1xf32> to vector<24x24xf32>
    %55 = arith.subf %51, %54 : vector<24x24xf32>
    %56 = math.exp %55 : vector<24x24xf32>
    %cst_24 = arith.constant dense<0.000000e+00> : vector<24xf32>
    %57 = vector.multi_reduction <add>, %56, %cst_24 [1] : vector<24x24xf32> to vector<24xf32>
    %58 = vector.shape_cast %57 : vector<24xf32> to vector<24x1xf32>
    %59 = arith.truncf %56 : vector<24x24xf32> to vector<24x24xbf16>
    %cst_25 = arith.constant dense<0.000000e+00> : vector<24x8xf32>
    %60 = tpu.matmul %59, %48, %cst_25 {dimension_numbers = #tpu.dot_dimension_numbers<[1], [0], [0], [1], [0, 0, 1, 1], [], []>} : vector<24x24xbf16>, vector<24x8xbf16>, vector<24x8xf32> -> vector<24x8xf32>
    %61 = tpu.reciprocal %58 {approx = true} : vector<24x1xf32> -> vector<24x1xf32>
    %62 = vector.broadcast %61 : vector<24x1xf32> to vector<24x8xf32>
    %63 = arith.mulf %60, %62 : vector<24x8xf32>
    %64 = arith.truncf %63 : vector<24x8xf32> to vector<24x8xbf16>
    %c0_26 = arith.constant 0 : index
    %c16_27 = arith.constant 16 : index
    %65 = vector.load %arg6[%c0_26, %c16_27] : memref<24x32xbf16, #tpu.memory_space<vmem>>, vector<24x8xbf16>
    tpu.vector_store %arg6[%c0_26, %c16_27], %64 {strides = array<i32>} : memref<24x32xbf16, #tpu.memory_space<vmem>>, vector<24x8xbf16>,
    %c0_28 = arith.constant 0 : index
    %c24 = arith.constant 24 : index
    %66 = vector.load %arg1[%c0_28, %c24] : memref<24x96xbf16, #tpu.memory_space<vmem>>, vector<24x8xbf16>
    %c0_29 = arith.constant 0 : index
    %c56 = arith.constant 56 : index
    %67 = vector.load %arg1[%c0_29, %c56] : memref<24x96xbf16, #tpu.memory_space<vmem>>, vector<24x8xbf16>
    %c0_30 = arith.constant 0 : index
    %c88 = arith.constant 88 : index
    %68 = vector.load %arg1[%c0_30, %c88] : memref<24x96xbf16, #tpu.memory_space<vmem>>, vector<24x8xbf16>
    %cst_31 = arith.constant dense<0.000000e+00> : vector<24x24xf32>
    %69 = tpu.matmul %66, %67, %cst_31 {dimension_numbers = #tpu.dot_dimension_numbers<[1], [1], [0], [0], [0, 0, 1, 0], [], []>} : vector<24x8xbf16>, vector<24x8xbf16>, vector<24x24xf32> -> vector<24x24xf32>
    %70 = vector.broadcast %5 : vector<1x24xf32> to vector<24x24xf32>
    %71 = arith.addf %69, %70 : vector<24x24xf32>
    %cst_32 = arith.constant dense<0xFF800000> : vector<24xf32>
    %72 = vector.multi_reduction <maximumf>, %71, %cst_32 [1] : vector<24x24xf32> to vector<24xf32>
    %73 = vector.shape_cast %72 : vector<24xf32> to vector<24x1xf32>
    %74 = vector.broadcast %73 : vector<24x1xf32> to vector<24x24xf32>
    %75 = arith.subf %71, %74 : vector<24x24xf32>
    %76 = math.exp %75 : vector<24x24xf32>
    %cst_33 = arith.constant dense<0.000000e+00> : vector<24xf32>
    %77 = vector.multi_reduction <add>, %76, %cst_33 [1] : vector<24x24xf32> to vector<24xf32>
    %78 = vector.shape_cast %77 : vector<24xf32> to vector<24x1xf32>
    %79 = arith.truncf %76 : vector<24x24xf32> to vector<24x24xbf16>
    %cst_34 = arith.constant dense<0.000000e+00> : vector<24x8xf32>
    %80 = tpu.matmul %79, %68, %cst_34 {dimension_numbers = #tpu.dot_dimension_numbers<[1], [0], [0], [1], [0, 0, 1, 1], [], []>} : vector<24x24xbf16>, vector<24x8xbf16>, vector<24x8xf32> -> vector<24x8xf32>
    %81 = tpu.reciprocal %78 {approx = true} : vector<24x1xf32> -> vector<24x1xf32>
    %82 = vector.broadcast %81 : vector<24x1xf32> to vector<24x8xf32>
    %83 = arith.mulf %80, %82 : vector<24x8xf32>
    %84 = arith.truncf %83 : vector<24x8xf32> to vector<24x8xbf16>
    %c0_35 = arith.constant 0 : index
    %c24_36 = arith.constant 24 : index
    %85 = vector.load %arg6[%c0_35, %c24_36] : memref<24x32xbf16, #tpu.memory_space<vmem>>, vector<24x8xbf16>
    tpu.vector_store %arg6[%c0_35, %c24_36], %84 {strides = array<i32>} : memref<24x32xbf16, #tpu.memory_space<vmem>>, vector<24x8xbf16>,
    %c0_37 = arith.constant 0 : index
    %c0_38 = arith.constant 0 : index
    %86 = vector.load %arg6[%c0_37, %c0_38] : memref<24x32xbf16, #tpu.memory_space<vmem>>, vector<24x32xbf16>
    %c0_39 = arith.constant 0 : index
    %c0_40 = arith.constant 0 : index
    %87 = vector.load %arg2[%c0_39, %c0_40] : memref<32x32xbf16, #tpu.memory_space<vmem>>, vector<32x32xbf16>
    %cst_41 = arith.constant dense<0.000000e+00> : vector<24x32xf32>
    %88 = tpu.matmul %86, %87, %cst_41 {dimension_numbers = #tpu.dot_dimension_numbers<[1], [0], [0], [1], [0, 0, 1, 1], [], []>} : vector<24x32xbf16>, vector<32x32xbf16>, vector<24x32xf32> -> vector<24x32xf32>
    %c0_42 = arith.constant 0 : index
    %c0_43 = arith.constant 0 : index
    %89 = vector.load %arg3[%c0_42, %c0_43] : memref<1x32xf32, #tpu.memory_space<vmem>>, vector<1x32xf32>
    %90 = vector.broadcast %89 : vector<1x32xf32> to vector<24x32xf32>
    %91 = arith.addf %88, %90 : vector<24x32xf32>
    %c0_44 = arith.constant 0 : index
    %c0_45 = arith.constant 0 : index
    %92 = vector.load %arg4[%c0_44, %c0_45] : memref<24x32xbf16, #tpu.memory_space<vmem>>, vector<24x32xbf16>
    %93 = arith.extf %92 : vector<24x32xbf16> to vector<24x32xf32>
    %94 = arith.addf %91, %93 : vector<24x32xf32>
    %95 = arith.truncf %94 : vector<24x32xf32> to vector<24x32xbf16>
    %c0_46 = arith.constant 0 : index
    %c0_47 = arith.constant 0 : index
    %96 = vector.load %arg5[%c0_46, %c0_47] : memref<24x32xbf16, #tpu.memory_space<vmem>>, vector<24x32xbf16>
    tpu.vector_store %arg5[%c0_46, %c0_47], %95 {strides = array<i32>} : memref<24x32xbf16, #tpu.memory_space<vmem>>, vector<24x32xbf16>,
    return
  }
  func.func @transform_0(%arg0: i32) -> (i32, i32) {
    %c0_i32 = arith.constant 0 : i32
    %c0_i32_0 = arith.constant 0 : i32
    return %arg0, %c0_i32 : i32, i32
  }
  func.func @transform_1(%arg0: i32) -> (i32, i32) {
    %c0_i32 = arith.constant 0 : i32
    %c0_i32_0 = arith.constant 0 : i32
    %c0_i32_1 = arith.constant 0 : i32
    return %c0_i32, %c0_i32_0 : i32, i32
  }
  func.func @transform_2(%arg0: i32) -> (i32, i32) {
    %c0_i32 = arith.constant 0 : i32
    %c0_i32_0 = arith.constant 0 : i32
    %c0_i32_1 = arith.constant 0 : i32
    return %c0_i32, %c0_i32_0 : i32, i32
  }
  func.func @transform_3(%arg0: i32) -> (i32, i32) {
    %c0_i32 = arith.constant 0 : i32
    %c0_i32_0 = arith.constant 0 : i32
    return %arg0, %c0_i32 : i32, i32
  }
  func.func @transform_4(%arg0: i32) -> (i32, i32) {
    %c0_i32 = arith.constant 0 : i32
    %c0_i32_0 = arith.constant 0 : i32
    return %arg0, %c0_i32 : i32, i32
  }
}

module attributes {stable_mosaic.version = 11 : i64} {
  func.func @_ln_matmul_kernel(%arg0: i32, %arg1: i32, %arg2: memref<48x32xbf16, #tpu.memory_space<vmem>>, %arg3: memref<1x32xf32, #tpu.memory_space<vmem>>, %arg4: memref<1x32xf32, #tpu.memory_space<vmem>>, %arg5: memref<32x128xbf16, #tpu.memory_space<vmem>>, %arg6: memref<1x128xf32, #tpu.memory_space<vmem>>, %arg7: memref<48x128xbf16, #tpu.memory_space<vmem>>, %arg8: memref<48x32xbf16, #tpu.memory_space<vmem>>) attributes {dimension_semantics = [#tpu.dimension_semantics<parallel>, #tpu.dimension_semantics<arbitrary>], iteration_bounds = array<i64: 1, 1>, scalar_prefetch = 0 : i64, scratch_operands = 1 : i64, tpu.core_type = #tpu.core_type<tc>, window_params = [{transform_indices = @transform_0, window_bounds = array<i64: 48, 32>}, {pipeline_mode = #tpu.pipeline_mode<synchronous>, transform_indices = @transform_1, window_bounds = array<i64: 1, 32>}, {pipeline_mode = #tpu.pipeline_mode<synchronous>, transform_indices = @transform_2, window_bounds = array<i64: 1, 32>}, {transform_indices = @transform_3, window_bounds = array<i64: 32, 128>}, {transform_indices = @transform_4, window_bounds = array<i64: 1, 128>}, {transform_indices = @transform_5, window_bounds = array<i64: 48, 128>}]} {
    %c0_i32 = arith.constant 0 : i32
    %0 = arith.cmpi eq, %arg1, %c0_i32 : i32
    %1 = arith.extui %0 : i1 to i32
    %c0_i32_0 = arith.constant 0 : i32
    %2 = arith.cmpi ne, %1, %c0_i32_0 : i32
    scf.if %2 {
      %c0_11 = arith.constant 0 : index
      %c0_12 = arith.constant 0 : index
      %19 = vector.load %arg2[%c0_11, %c0_12] : memref<48x32xbf16, #tpu.memory_space<vmem>>, vector<48x32xbf16>
      %20 = arith.extf %19 : vector<48x32xbf16> to vector<48x32xf32>
      %cst_13 = arith.constant dense<0.000000e+00> : vector<48xf32>
      %21 = vector.multi_reduction <add>, %20, %cst_13 [1] : vector<48x32xf32> to vector<48xf32>
      %22 = vector.shape_cast %21 : vector<48xf32> to vector<48x1xf32>
      %cst_14 = arith.constant 3.200000e+01 : f32
      %23 = vector.broadcast %cst_14 : f32 to vector<48x1xf32>
      %24 = arith.divf %22, %23 : vector<48x1xf32>
      %25 = vector.broadcast %24 : vector<48x1xf32> to vector<48x32xf32>
      %26 = arith.subf %20, %25 : vector<48x32xf32>
      %27 = arith.mulf %26, %26 : vector<48x32xf32>
      %cst_15 = arith.constant dense<0.000000e+00> : vector<48xf32>
      %28 = vector.multi_reduction <add>, %27, %cst_15 [1] : vector<48x32xf32> to vector<48xf32>
      %29 = vector.shape_cast %28 : vector<48xf32> to vector<48x1xf32>
      %cst_16 = arith.constant 3.200000e+01 : f32
      %30 = vector.broadcast %cst_16 : f32 to vector<48x1xf32>
      %31 = arith.divf %29, %30 : vector<48x1xf32>
      %cst_17 = arith.constant 9.99999997E-7 : f32
      %32 = vector.broadcast %cst_17 : f32 to vector<48x1xf32>
      %33 = arith.addf %31, %32 : vector<48x1xf32>
      %34 = math.rsqrt %33 : vector<48x1xf32>
      %35 = vector.broadcast %34 : vector<48x1xf32> to vector<48x32xf32>
      %36 = arith.mulf %26, %35 : vector<48x32xf32>
      %c0_18 = arith.constant 0 : index
      %c0_19 = arith.constant 0 : index
      %37 = vector.load %arg3[%c0_18, %c0_19] : memref<1x32xf32, #tpu.memory_space<vmem>>, vector<1x32xf32>
      %38 = vector.broadcast %37 : vector<1x32xf32> to vector<48x32xf32>
      %39 = arith.mulf %36, %38 : vector<48x32xf32>
      %c0_20 = arith.constant 0 : index
      %c0_21 = arith.constant 0 : index
      %40 = vector.load %arg4[%c0_20, %c0_21] : memref<1x32xf32, #tpu.memory_space<vmem>>, vector<1x32xf32>
      %41 = vector.broadcast %40 : vector<1x32xf32> to vector<48x32xf32>
      %42 = arith.addf %39, %41 : vector<48x32xf32>
      %43 = arith.truncf %42 : vector<48x32xf32> to vector<48x32xbf16>
      %c0_22 = arith.constant 0 : index
      %c0_23 = arith.constant 0 : index
      %44 = vector.load %arg8[%c0_22, %c0_23] : memref<48x32xbf16, #tpu.memory_space<vmem>>, vector<48x32xbf16>
      tpu.vector_store %arg8[%c0_22, %c0_23], %43 {strides = array<i32>} : memref<48x32xbf16, #tpu.memory_space<vmem>>, vector<48x32xbf16>,
    } else {
    }
    %c0 = arith.constant 0 : index
    %c0_1 = arith.constant 0 : index
    %3 = vector.load %arg8[%c0, %c0_1] : memref<48x32xbf16, #tpu.memory_space<vmem>>, vector<48x32xbf16>
    %c0_2 = arith.constant 0 : index
    %c0_3 = arith.constant 0 : index
    %4 = vector.load %arg5[%c0_2, %c0_3] : memref<32x128xbf16, #tpu.memory_space<vmem>>, vector<32x128xbf16>
    %cst = arith.constant dense<0.000000e+00> : vector<48x128xf32>
    %5 = tpu.matmul %3, %4, %cst {dimension_numbers = #tpu.dot_dimension_numbers<[1], [0], [0], [1], [0, 0, 1, 1], [], []>} : vector<48x32xbf16>, vector<32x128xbf16>, vector<48x128xf32> -> vector<48x128xf32>
    %c0_4 = arith.constant 0 : index
    %c0_5 = arith.constant 0 : index
    %6 = vector.load %arg6[%c0_4, %c0_5] : memref<1x128xf32, #tpu.memory_space<vmem>>, vector<1x128xf32>
    %7 = vector.broadcast %6 : vector<1x128xf32> to vector<48x128xf32>
    %8 = arith.addf %5, %7 : vector<48x128xf32>
    %cst_6 = arith.constant 5.000000e-01 : f32
    %9 = vector.broadcast %cst_6 : f32 to vector<48x128xf32>
    %10 = arith.mulf %9, %8 : vector<48x128xf32>
    %cst_7 = arith.constant 0.707106769 : f32
    %11 = vector.broadcast %cst_7 : f32 to vector<48x128xf32>
    %12 = arith.mulf %8, %11 : vector<48x128xf32>
    %13 = math.erf %12 : vector<48x128xf32>
    %cst_8 = arith.constant 1.000000e+00 : f32
    %14 = vector.broadcast %cst_8 : f32 to vector<48x128xf32>
    %15 = arith.addf %14, %13 : vector<48x128xf32>
    %16 = arith.mulf %10, %15 : vector<48x128xf32>
    %17 = arith.truncf %16 : vector<48x128xf32> to vector<48x128xbf16>
    %c0_9 = arith.constant 0 : index
    %c0_10 = arith.constant 0 : index
    %18 = vector.load %arg7[%c0_9, %c0_10] : memref<48x128xbf16, #tpu.memory_space<vmem>>, vector<48x128xbf16>
    tpu.vector_store %arg7[%c0_9, %c0_10], %17 {strides = array<i32>} : memref<48x128xbf16, #tpu.memory_space<vmem>>, vector<48x128xbf16>,
    return
  }
  func.func @transform_0(%arg0: i32, %arg1: i32) -> (i32, i32) {
    %c0_i32 = arith.constant 0 : i32
    %c0_i32_0 = arith.constant 0 : i32
    return %arg0, %c0_i32 : i32, i32
  }
  func.func @transform_1(%arg0: i32, %arg1: i32) -> (i32, i32) {
    %c0_i32 = arith.constant 0 : i32
    %c0_i32_0 = arith.constant 0 : i32
    %c0_i32_1 = arith.constant 0 : i32
    return %c0_i32, %c0_i32_0 : i32, i32
  }
  func.func @transform_2(%arg0: i32, %arg1: i32) -> (i32, i32) {
    %c0_i32 = arith.constant 0 : i32
    %c0_i32_0 = arith.constant 0 : i32
    %c0_i32_1 = arith.constant 0 : i32
    return %c0_i32, %c0_i32_0 : i32, i32
  }
  func.func @transform_3(%arg0: i32, %arg1: i32) -> (i32, i32) {
    %c0_i32 = arith.constant 0 : i32
    %c0_i32_0 = arith.constant 0 : i32
    return %c0_i32, %arg1 : i32, i32
  }
  func.func @transform_4(%arg0: i32, %arg1: i32) -> (i32, i32) {
    %c0_i32 = arith.constant 0 : i32
    %c0_i32_0 = arith.constant 0 : i32
    return %c0_i32, %arg1 : i32, i32
  }
  func.func @transform_5(%arg0: i32, %arg1: i32) -> (i32, i32) {
    %c0_i32 = arith.constant 0 : i32
    return %arg0, %arg1 : i32, i32
  }
}

module attributes {stable_mosaic.version = 11 : i64} {
  func.func @_ln_matmul_kernel(%arg0: i32, %arg1: i32, %arg2: memref<2x32xbf16, #tpu.memory_space<vmem>>, %arg3: memref<1x32xf32, #tpu.memory_space<vmem>>, %arg4: memref<1x32xf32, #tpu.memory_space<vmem>>, %arg5: memref<32x10xbf16, #tpu.memory_space<vmem>>, %arg6: memref<1x10xf32, #tpu.memory_space<vmem>>, %arg7: memref<2x10xf32, #tpu.memory_space<vmem>>, %arg8: memref<2x32xbf16, #tpu.memory_space<vmem>>) attributes {dimension_semantics = [#tpu.dimension_semantics<parallel>, #tpu.dimension_semantics<arbitrary>], iteration_bounds = array<i64: 1, 1>, scalar_prefetch = 0 : i64, scratch_operands = 1 : i64, tpu.core_type = #tpu.core_type<tc>, window_params = [{transform_indices = @transform_0, window_bounds = array<i64: 2, 32>}, {pipeline_mode = #tpu.pipeline_mode<synchronous>, transform_indices = @transform_1, window_bounds = array<i64: 1, 32>}, {pipeline_mode = #tpu.pipeline_mode<synchronous>, transform_indices = @transform_2, window_bounds = array<i64: 1, 32>}, {transform_indices = @transform_3, window_bounds = array<i64: 32, 10>}, {transform_indices = @transform_4, window_bounds = array<i64: 1, 10>}, {transform_indices = @transform_5, window_bounds = array<i64: 2, 10>}]} {
    %c0_i32 = arith.constant 0 : i32
    %0 = arith.cmpi eq, %arg1, %c0_i32 : i32
    %1 = arith.extui %0 : i1 to i32
    %c0_i32_0 = arith.constant 0 : i32
    %2 = arith.cmpi ne, %1, %c0_i32_0 : i32
    scf.if %2 {
      %c0_8 = arith.constant 0 : index
      %c0_9 = arith.constant 0 : index
      %10 = vector.load %arg2[%c0_8, %c0_9] : memref<2x32xbf16, #tpu.memory_space<vmem>>, vector<2x32xbf16>
      %11 = arith.extf %10 : vector<2x32xbf16> to vector<2x32xf32>
      %cst_10 = arith.constant dense<0.000000e+00> : vector<2xf32>
      %12 = vector.multi_reduction <add>, %11, %cst_10 [1] : vector<2x32xf32> to vector<2xf32>
      %13 = vector.shape_cast %12 : vector<2xf32> to vector<2x1xf32>
      %cst_11 = arith.constant 3.200000e+01 : f32
      %14 = vector.broadcast %cst_11 : f32 to vector<2x1xf32>
      %15 = arith.divf %13, %14 : vector<2x1xf32>
      %16 = vector.broadcast %15 : vector<2x1xf32> to vector<2x32xf32>
      %17 = arith.subf %11, %16 : vector<2x32xf32>
      %18 = arith.mulf %17, %17 : vector<2x32xf32>
      %cst_12 = arith.constant dense<0.000000e+00> : vector<2xf32>
      %19 = vector.multi_reduction <add>, %18, %cst_12 [1] : vector<2x32xf32> to vector<2xf32>
      %20 = vector.shape_cast %19 : vector<2xf32> to vector<2x1xf32>
      %cst_13 = arith.constant 3.200000e+01 : f32
      %21 = vector.broadcast %cst_13 : f32 to vector<2x1xf32>
      %22 = arith.divf %20, %21 : vector<2x1xf32>
      %cst_14 = arith.constant 9.99999997E-7 : f32
      %23 = vector.broadcast %cst_14 : f32 to vector<2x1xf32>
      %24 = arith.addf %22, %23 : vector<2x1xf32>
      %25 = math.rsqrt %24 : vector<2x1xf32>
      %26 = vector.broadcast %25 : vector<2x1xf32> to vector<2x32xf32>
      %27 = arith.mulf %17, %26 : vector<2x32xf32>
      %c0_15 = arith.constant 0 : index
      %c0_16 = arith.constant 0 : index
      %28 = vector.load %arg3[%c0_15, %c0_16] : memref<1x32xf32, #tpu.memory_space<vmem>>, vector<1x32xf32>
      %29 = vector.broadcast %28 : vector<1x32xf32> to vector<2x32xf32>
      %30 = arith.mulf %27, %29 : vector<2x32xf32>
      %c0_17 = arith.constant 0 : index
      %c0_18 = arith.constant 0 : index
      %31 = vector.load %arg4[%c0_17, %c0_18] : memref<1x32xf32, #tpu.memory_space<vmem>>, vector<1x32xf32>
      %32 = vector.broadcast %31 : vector<1x32xf32> to vector<2x32xf32>
      %33 = arith.addf %30, %32 : vector<2x32xf32>
      %34 = arith.truncf %33 : vector<2x32xf32> to vector<2x32xbf16>
      %c0_19 = arith.constant 0 : index
      %c0_20 = arith.constant 0 : index
      %35 = vector.load %arg8[%c0_19, %c0_20] : memref<2x32xbf16, #tpu.memory_space<vmem>>, vector<2x32xbf16>
      tpu.vector_store %arg8[%c0_19, %c0_20], %34 {strides = array<i32>} : memref<2x32xbf16, #tpu.memory_space<vmem>>, vector<2x32xbf16>,
    } else {
    }
    %c0 = arith.constant 0 : index
    %c0_1 = arith.constant 0 : index
    %3 = vector.load %arg8[%c0, %c0_1] : memref<2x32xbf16, #tpu.memory_space<vmem>>, vector<2x32xbf16>
    %c0_2 = arith.constant 0 : index
    %c0_3 = arith.constant 0 : index
    %4 = vector.load %arg5[%c0_2, %c0_3] : memref<32x10xbf16, #tpu.memory_space<vmem>>, vector<32x10xbf16>
    %cst = arith.constant dense<0.000000e+00> : vector<2x10xf32>
    %5 = tpu.matmul %3, %4, %cst {dimension_numbers = #tpu.dot_dimension_numbers<[1], [0], [0], [1], [0, 0, 1, 1], [], []>} : vector<2x32xbf16>, vector<32x10xbf16>, vector<2x10xf32> -> vector<2x10xf32>
    %c0_4 = arith.constant 0 : index
    %c0_5 = arith.constant 0 : index
    %6 = vector.load %arg6[%c0_4, %c0_5] : memref<1x10xf32, #tpu.memory_space<vmem>>, vector<1x10xf32>
    %7 = vector.broadcast %6 : vector<1x10xf32> to vector<2x10xf32>
    %8 = arith.addf %5, %7 : vector<2x10xf32>
    %c0_6 = arith.constant 0 : index
    %c0_7 = arith.constant 0 : index
    %9 = vector.load %arg7[%c0_6, %c0_7] : memref<2x10xf32, #tpu.memory_space<vmem>>, vector<2x10xf32>
    tpu.vector_store %arg7[%c0_6, %c0_7], %8 {strides = array<i32>} : memref<2x10xf32, #tpu.memory_space<vmem>>, vector<2x10xf32>,
    return
  }
  func.func @transform_0(%arg0: i32, %arg1: i32) -> (i32, i32) {
    %c0_i32 = arith.constant 0 : i32
    %c0_i32_0 = arith.constant 0 : i32
    return %arg0, %c0_i32 : i32, i32
  }
  func.func @transform_1(%arg0: i32, %arg1: i32) -> (i32, i32) {
    %c0_i32 = arith.constant 0 : i32
    %c0_i32_0 = arith.constant 0 : i32
    %c0_i32_1 = arith.constant 0 : i32
    return %c0_i32, %c0_i32_0 : i32, i32
  }
  func.func @transform_2(%arg0: i32, %arg1: i32) -> (i32, i32) {
    %c0_i32 = arith.constant 0 : i32
    %c0_i32_0 = arith.constant 0 : i32
    %c0_i32_1 = arith.constant 0 : i32
    return %c0_i32, %c0_i32_0 : i32, i32
  }
  func.func @transform_3(%arg0: i32, %arg1: i32) -> (i32, i32) {
    %c0_i32 = arith.constant 0 : i32
    %c0_i32_0 = arith.constant 0 : i32
    return %c0_i32, %arg1 : i32, i32
  }
  func.func @transform_4(%arg0: i32, %arg1: i32) -> (i32, i32) {
    %c0_i32 = arith.constant 0 : i32
    %c0_i32_0 = arith.constant 0 : i32
    return %c0_i32, %arg1 : i32, i32
  }
  func.func @transform_5(%arg0: i32, %arg1: i32) -> (i32, i32) {
    %c0_i32 = arith.constant 0 : i32
    return %arg0, %arg1 : i32, i32
  }
}

module attributes {stable_mosaic.version = 11 : i64} {
  func.func @_matmul_kernel(%arg0: i32, %arg1: i32, %arg2: i32, %arg3: memref<48x128xbf16, #tpu.memory_space<vmem>>, %arg4: memref<128x32xbf16, #tpu.memory_space<vmem>>, %arg5: memref<1x32xf32, #tpu.memory_space<vmem>>, %arg6: memref<48x32xbf16, #tpu.memory_space<vmem>>, %arg7: memref<48x32xbf16, #tpu.memory_space<vmem>>, %arg8: memref<48x32xf32, #tpu.memory_space<vmem>>) attributes {dimension_semantics = [#tpu.dimension_semantics<parallel>, #tpu.dimension_semantics<parallel>, #tpu.dimension_semantics<arbitrary>], iteration_bounds = array<i64: 1, 1, 1>, scalar_prefetch = 0 : i64, scratch_operands = 1 : i64, tpu.core_type = #tpu.core_type<tc>, window_params = [{transform_indices = @transform_0, window_bounds = array<i64: 48, 128>}, {transform_indices = @transform_1, window_bounds = array<i64: 128, 32>}, {transform_indices = @transform_2, window_bounds = array<i64: 1, 32>}, {transform_indices = @transform_3, window_bounds = array<i64: 48, 32>}, {transform_indices = @transform_4, window_bounds = array<i64: 48, 32>}]} {
    %c0_i32 = arith.constant 0 : i32
    %0 = arith.cmpi eq, %arg2, %c0_i32 : i32
    %1 = arith.extui %0 : i1 to i32
    %c0_i32_0 = arith.constant 0 : i32
    %2 = arith.cmpi ne, %1, %c0_i32_0 : i32
    scf.if %2 {
      %cst_10 = arith.constant 0.000000e+00 : f32
      %12 = vector.broadcast %cst_10 : f32 to vector<48x32xf32>
      %c0_11 = arith.constant 0 : index
      %c0_12 = arith.constant 0 : index
      %13 = vector.load %arg8[%c0_11, %c0_12] : memref<48x32xf32, #tpu.memory_space<vmem>>, vector<48x32xf32>
      tpu.vector_store %arg8[%c0_11, %c0_12], %12 {strides = array<i32>} : memref<48x32xf32, #tpu.memory_space<vmem>>, vector<48x32xf32>,
    } else {
    }
    %c0 = arith.constant 0 : index
    %c0_1 = arith.constant 0 : index
    %3 = vector.load %arg8[%c0, %c0_1] : memref<48x32xf32, #tpu.memory_space<vmem>>, vector<48x32xf32>
    %c0_2 = arith.constant 0 : index
    %c0_3 = arith.constant 0 : index
    %4 = vector.load %arg3[%c0_2, %c0_3] : memref<48x128xbf16, #tpu.memory_space<vmem>>, vector<48x128xbf16>
    %c0_4 = arith.constant 0 : index
    %c0_5 = arith.constant 0 : index
    %5 = vector.load %arg4[%c0_4, %c0_5] : memref<128x32xbf16, #tpu.memory_space<vmem>>, vector<128x32xbf16>
    %cst = arith.constant dense<0.000000e+00> : vector<48x32xf32>
    %6 = tpu.matmul %4, %5, %cst {dimension_numbers = #tpu.dot_dimension_numbers<[1], [0], [0], [1], [0, 0, 1, 1], [], []>} : vector<48x128xbf16>, vector<128x32xbf16>, vector<48x32xf32> -> vector<48x32xf32>
    %7 = arith.addf %3, %6 : vector<48x32xf32>
    %c0_6 = arith.constant 0 : index
    %c0_7 = arith.constant 0 : index
    %8 = vector.load %arg8[%c0_6, %c0_7] : memref<48x32xf32, #tpu.memory_space<vmem>>, vector<48x32xf32>
    tpu.vector_store %arg8[%c0_6, %c0_7], %7 {strides = array<i32>} : memref<48x32xf32, #tpu.memory_space<vmem>>, vector<48x32xf32>,
    %c0_i32_8 = arith.constant 0 : i32
    %9 = arith.cmpi eq, %arg2, %c0_i32_8 : i32
    %10 = arith.extui %9 : i1 to i32
    %c0_i32_9 = arith.constant 0 : i32
    %11 = arith.cmpi ne, %10, %c0_i32_9 : i32
    scf.if %11 {
      %c0_10 = arith.constant 0 : index
      %c0_11 = arith.constant 0 : index
      %12 = vector.load %arg8[%c0_10, %c0_11] : memref<48x32xf32, #tpu.memory_space<vmem>>, vector<48x32xf32>
      %c0_12 = arith.constant 0 : index
      %c0_13 = arith.constant 0 : index
      %13 = vector.load %arg5[%c0_12, %c0_13] : memref<1x32xf32, #tpu.memory_space<vmem>>, vector<1x32xf32>
      %14 = vector.broadcast %13 : vector<1x32xf32> to vector<48x32xf32>
      %15 = arith.addf %12, %14 : vector<48x32xf32>
      %c0_14 = arith.constant 0 : index
      %c0_15 = arith.constant 0 : index
      %16 = vector.load %arg6[%c0_14, %c0_15] : memref<48x32xbf16, #tpu.memory_space<vmem>>, vector<48x32xbf16>
      %17 = arith.extf %16 : vector<48x32xbf16> to vector<48x32xf32>
      %18 = arith.addf %15, %17 : vector<48x32xf32>
      %19 = arith.truncf %18 : vector<48x32xf32> to vector<48x32xbf16>
      %c0_16 = arith.constant 0 : index
      %c0_17 = arith.constant 0 : index
      %20 = vector.load %arg7[%c0_16, %c0_17] : memref<48x32xbf16, #tpu.memory_space<vmem>>, vector<48x32xbf16>
      tpu.vector_store %arg7[%c0_16, %c0_17], %19 {strides = array<i32>} : memref<48x32xbf16, #tpu.memory_space<vmem>>, vector<48x32xbf16>,
    } else {
    }
    return
  }
  func.func @transform_0(%arg0: i32, %arg1: i32, %arg2: i32) -> (i32, i32) {
    %c0_i32 = arith.constant 0 : i32
    return %arg0, %arg2 : i32, i32
  }
  func.func @transform_1(%arg0: i32, %arg1: i32, %arg2: i32) -> (i32, i32) {
    %c0_i32 = arith.constant 0 : i32
    return %arg2, %arg1 : i32, i32
  }
  func.func @transform_2(%arg0: i32, %arg1: i32, %arg2: i32) -> (i32, i32) {
    %c0_i32 = arith.constant 0 : i32
    %c0_i32_0 = arith.constant 0 : i32
    return %c0_i32, %arg1 : i32, i32
  }
  func.func @transform_3(%arg0: i32, %arg1: i32, %arg2: i32) -> (i32, i32) {
    %c0_i32 = arith.constant 0 : i32
    return %arg0, %arg1 : i32, i32
  }
  func.func @transform_4(%arg0: i32, %arg1: i32, %arg2: i32) -> (i32, i32) {
    %c0_i32 = arith.constant 0 : i32
    return %arg0, %arg1 : i32, i32
  }
}

</mosaic_0001>

<bundles_post_ra>
// kernel: vit_forward.10
= control target key start
LH: loop header
LB: loop body
LE: loop exit
PB: predicated region body
PF: predicated region fallthrough
CT: control target
= control target key end

     0   :  { %vm19_vm0 = vcmask 261120   ;;  %v199_v1 = vmov 0.0   ;;  %vm58_vm1 = vcmask 392192   ;;  %vm157_vm2 = vcmask 257024   ;;  %s264_s1 = inlined_call_operand.vmem [shape: bf16[48,32], index: 1, kind: input, shape index: {}]   ;;  %s265_s0 = inlined_call_operand.vmem [shape: f32[32,48], index: 0, kind: input, shape index: {}]   ;;  %s266_s2 = inlined_call_operand.vmem [shape: f32[1,32], index: 2, kind: input, shape index: {}]   ;;  %s267_s3 = inlined_call_operand.vmem [shape: bf16[32,32], index: 3, kind: output, shape index: {}]  }
   0x1   :  { %v196_v0 = vld [vmem:[%s264_s1] sm:$0xff]   ;;  %22 = vst.msk [vmem:[#allocation2 + $0x10] sm:$0xff] %vm19_vm0, %v199_v1  ;;  %20 = vst.msk [vmem:[#allocation2] sm:$0xff] %vm19_vm0, %v199_v1  ;;  %v197_v2 = vld [vmem:[%s264_s1 + $0x8] sm:$0xff]  }
   0x2   :  { %21 = vst.msk [vmem:[#allocation2 + $0x8] sm:$0xff] %vm19_vm0, %v199_v1  ;;  %23 = vst.msk [vmem:[#allocation2 + $0x18] sm:$0xff] %vm19_vm0, %v199_v1  ;;  %185 = vmatprep.subr.bf16.mxu0 %v196_v0  ;;  %v28_v3 = vld [vmem:[%s265_s0] sm:$0xff]  ;;  %v29_v4 = vld [vmem:[%s265_s0 + $0x8] sm:$0xff] }
   0x3   :  { %186 = vmatpush3.bf16.msra.mxu0 %v196_v0  ;;  %v198_v5 = vld [vmem:[%s264_s1 + $0x10] sm:$0xff]   ;;  %v32_v6 = vpack.c.bf16 %v29_v4, %v28_v3  ;;  %v31_v8 = vld [vmem:[%s265_s0 + $0x18] sm:$0xff]  ;;  %v171_v22 = vld [vmem:[%s266_s2] ss:$0 sm:$0xff] }
   0x4   :  { %187 = vmatprep.subr.bf16.mxu0 %v197_v2  ;;  %v30_v7 = vld [vmem:[%s265_s0 + $0x10] sm:$0xff] }
   0x5   :  { %191 = vmatprep.mubr.msk.bf16.mxu0 %vm58_vm1, %v32_v6  ;;  %v33_v9 = vpack.c.bf16 %v31_v8, %v30_v7 }
   0x7   :  { %188 = vmatpush3.bf16.msra.mxu0 %v197_v2 }
   0x8   :  { %189 = vmatprep.subr.bf16.mxu0 %v198_v5  ;;  %v26_v10 = vld [vmem:[#allocation2 + $0x10] sm:$0xff]  ;;  %v24_v11 = vld [vmem:[#allocation2] sm:$0xff] }
   0x9   :  { %v27_v13 = vld [vmem:[#allocation2 + $0x18] sm:$0xff]  ;;  %v25_v16 = vld [vmem:[#allocation2 + $0x8] sm:$0xff] }
   0xb   :  { %190 = vmatpush3.bf16.msra.mxu0 %v198_v5 }
   0xe   :  { %192 = vmatmul.mubr.msk.bf16.vlgmr.msra.gmra.mrb[0].mxu0 %vm58_vm1, %v33_v9 }
  0xe1   :  { %v193_v12 = vpop.f32.mrb[0].mxu0 }
  0xe2   :  { %v116_v14 = vadd.f32 %v193_v12, %v26_v10  ;;  %v99_v15 = vpop.f32.mrb[1].mxu0 }
  0xe3   :  { %v114_v17 = vadd.f32 %v99_v15, %v24_v11  ;;  %v194_v18 = vpop.f32.mrb[2].mxu0 }
  0xe4   :  { %121 = vst.msk [vmem:[#allocation2 + $0x10] sm:$0xff] %vm19_vm0, %v116_v14  ;;  %v117_v19 = vadd.f32 %v194_v18, %v27_v13  ;;  %v102_v20 = vpop.f32.mrb[3].mxu0 }
  0xe5   :  { %119 = vst.msk [vmem:[#allocation2] sm:$0xff] %vm19_vm0, %v114_v17  ;;  %v115_v21 = vadd.f32 %v102_v20, %v25_v16 }
  0xe6   :  { %122 = vst.msk [vmem:[#allocation2 + $0x18] sm:$0xff] %vm19_vm0, %v117_v19 }
  0xe7   :  { %120 = vst.msk [vmem:[#allocation2 + $0x8] sm:$0xff] %vm19_vm0, %v115_v21 }
  0xeb   :  { %v128_v23 = vld [vmem:[#allocation2 + $0x10] sm:$0xff] }
  0xec   :  { %v139_v24 = vadd.f32 %v171_v22, %v128_v23  ;;  %v126_v25 = vld [vmem:[#allocation2] sm:$0xff] }
  0xed   :  { %v137_v26 = vadd.f32 %v171_v22, %v126_v25  ;;  %v129_v27 = vld [vmem:[#allocation2 + $0x18] sm:$0xff] }
  0xee   :  { %v178_v28 = vpack.c.bf16 %v139_v24, %v139_v24  ;;  %v140_v29 = vadd.f32 %v171_v22, %v129_v27  ;;  %v127_v30 = vld [vmem:[#allocation2 + $0x8] sm:$0xff] }
  0xef   :  { %v176_v31 = vpack.c.bf16 %v137_v26, %v137_v26  ;;  %v138_v32 = vadd.f32 %v171_v22, %v127_v30 }
  0xf0   :  { %160 = vst.msk [vmem:[%s267_s3 + $0x8] sm:$0xf] %vm157_vm2, %v178_v28  ;;  %v179_v33 = vpack.c.bf16 %v140_v29, %v140_v29 }
  0xf1   :  { %158 = vst.msk [vmem:[%s267_s3] sm:$0xf] %vm157_vm2, %v176_v31  ;;  %v177_v34 = vpack.c.bf16 %v138_v32, %v138_v32 }
  0xf2   :  { %161 = vst.msk [vmem:[%s267_s3 + $0xc] sm:$0xf] %vm157_vm2, %v179_v33 }
  0xf3   :  { %159 = vst.msk [vmem:[%s267_s3 + $0x4] sm:$0xf] %vm157_vm2, %v177_v34 }

// kernel: vit_forward.11
= control target key start
LH: loop header
LB: loop body
LE: loop exit
PB: predicated region body
PF: predicated region fallthrough
CT: control target
= control target key end

     0   :  { %vm37_vm0 = vcmask 261120   ;;  %v352_v46 = vmov 0.0   ;;  %vm353_vm1 = vmmov 0   ;;  %vm266_vm2 = vcmask 781312   ;;  %s490_s0 = inlined_call_operand.vmem [shape: bf16[48,32], index: 0, kind: input, shape index: {}]   ;;  %s491_s3 = inlined_call_operand.vmem [shape: bf16[32,96], index: 3, kind: input, shape index: {}]   ;;  %s492_s1 = inlined_call_operand.vmem [shape: f32[1,32], index: 1, kind: input, shape index: {}]   ;;  %s493_s2 = inlined_call_operand.vmem [shape: f32[1,32], index: 2, kind: input, shape index: {}]   ;;  %s494_s4 = inlined_call_operand.vmem [shape: f32[1,96], index: 4, kind: input, shape index: {}]   ;;  %s495_s5 = inlined_call_operand.vmem [shape: bf16[48,96], index: 5, kind: output, shape index: {}]  }
   0x1   :  { %v309_v0 = vld [vmem:[%s490_s0 + $0x8] sm:$0xff]   ;;  %v298_v1 = vld [vmem:[%s490_s0] sm:$0xff]   ;;  %v310_v5 = vld [vmem:[%s490_s0 + $0x10] sm:$0xff]   ;;  %332 = vmatprep.subr.bf16.mxu1 %v352_v46  ;;  %316 = vmatprep.subr.bf16.mxu0 %v352_v46 }
   0x2   :  { %v303_v2 = vunpack.c.l.bf16 %v309_v0  ;;  %v304_v3 = vunpack.c.h.bf16 %v309_v0  ;;  %v299_v4 = vunpack.c.l.bf16 %v298_v1  ;;  %v300_v6 = vunpack.c.h.bf16 %v298_v1  ;;  %v338_v45 = vld [vmem:[%s491_s3] sm:$0xff]   ;;  %v339_v47 = vld [vmem:[%s491_s3 + $0x8] sm:$0xff]   ;;  %324 = vmatprep.mubr.msk.bf16.mxu1 %vm353_vm1, %v352_v46  ;;  %320 = vmatprep.mubr.msk.bf16.mxu0 %vm353_vm1, %v352_v46 }
   0x3   :  { %v307_v10 = vunpack.c.l.bf16 %v310_v5  ;;  %v308_v12 = vunpack.c.h.bf16 %v310_v5  ;;  %334 = vmatpush3.bf16.msra.mxu1 %v338_v45  ;;  %317 = vmatpush3.bf16.msra.mxu0 %v338_v45 }
   0x4   :  { %v44_v7 = vsel %vm37_vm0, %v303_v2, 0.0  ;;  %v38_v8 = vsel %vm37_vm0, %v299_v4, 0.0  ;;  %v47_v9 = vsel %vm37_vm0, %v304_v3, 0.0  ;;  %v41_v11 = vsel %vm37_vm0, %v300_v6, 0.0  ;;  %333 = vmatprep.subr.bf16.mxu1 %v352_v46  ;;  %318 = vmatprep.subr.bf16.mxu0 %v352_v46 }
   0x5   :  { %45 = vadd.xlane.f32.xlu0 %v44_v7  ;;  %39 = vadd.xlane.f32.xlu1 %v38_v8  ;;  %v50_v13 = vsel %vm37_vm0, %v307_v10, 0.0  ;;  %v53_v14 = vsel %vm37_vm0, %v308_v12, 0.0 }
   0x7   :  { %335 = vmatpush3.bf16.msra.mxu1 %v339_v47  ;;  %319 = vmatpush3.bf16.msra.mxu0 %v339_v47 }
   0x9   :  { %48 = vadd.xlane.f32.xlu0 %v47_v9  ;;  %42 = vadd.xlane.f32.xlu1 %v41_v11 }
   0xd   :  { %51 = vadd.xlane.f32.xlu0 %v50_v13  ;;  %54 = vadd.xlane.f32.xlu1 %v53_v14 }
  0x92   :  { %v46_v15 = vpop.xlane.xlu0 %45  ;;  %v40_v16 = vpop.xlane.xlu1 %39 }
  0x93   :  { %v59_v17 = vmul.f32 0.03125, %v46_v15  ;;  %v57_v18 = vmul.f32 0.03125, %v40_v16 }
  0x95   :  { %v399_v19 = vsub.f32 %v303_v2, %v59_v17  ;;  %v401_v20 = vsub.f32 %v299_v4, %v57_v18  ;;  %v277_v4 = vld [vmem:[%s492_s1] ss:$0 sm:$0xff] }
  0x96   :  { %v49_v21 = vpop.xlane.xlu0 %48  ;;  %v43_v22 = vpop.xlane.xlu1 %42 }
  0x97   :  { %v60_v23 = vmul.f32 0.03125, %v49_v21  ;;  %v71_v24 = vmul.f32 %v399_v19, %v399_v19  ;;  %v58_v25 = vmul.f32 0.03125, %v43_v22  ;;  %v69_v26 = vmul.f32 %v401_v20, %v401_v20 }
  0x99   :  { %v407_v27 = vsub.f32 %v304_v3, %v60_v23  ;;  %v81_v28 = vsel %vm37_vm0, %v71_v24, 0.0  ;;  %v410_v29 = vsub.f32 %v300_v6, %v58_v25  ;;  %v75_v31 = vsel %vm37_vm0, %v69_v26, 0.0 }
  0x9a   :  { %82 = vadd.xlane.f32.xlu0 %v81_v28  ;;  %v52_v30 = vpop.xlane.xlu0 %51  ;;  %v55_v32 = vpop.xlane.xlu1 %54 }
  0x9b   :  { %v61_v33 = vmul.f32 0.03125, %v52_v30  ;;  %v72_v34 = vmul.f32 %v407_v27, %v407_v27  ;;  %v62_v35 = vmul.f32 0.03125, %v55_v32  ;;  %v70_v36 = vmul.f32 %v410_v29, %v410_v29 }
  0x9d   :  { %v417_v37 = vsub.f32 %v307_v10, %v61_v33  ;;  %v84_v38 = vsel %vm37_vm0, %v72_v34, 0.0  ;;  %v420_v39 = vsub.f32 %v308_v12, %v62_v35  ;;  %v78_v41 = vsel %vm37_vm0, %v70_v36, 0.0  ;;  %v278_v10 = vld [vmem:[%s493_s2] ss:$0 sm:$0xff] }
  0x9e   :  { %85 = vadd.xlane.f32.xlu1 %v84_v38  ;;  %76 = vadd.xlane.f32.xlu0 %v75_v31  ;;  %v279_v34 = vld [vmem:[%s494_s4] ss:$0 sm:$0xff] }
  0x9f   :  { %v73_v40 = vmul.f32 %v417_v37, %v417_v37  ;;  %v74_v42 = vmul.f32 %v420_v39, %v420_v39 }
  0xa1   :  { %v87_v43 = vsel %vm37_vm0, %v73_v40, 0.0  ;;  %v90_v44 = vsel %vm37_vm0, %v74_v42, 0.0 }
  0xa2   :  { %88 = vadd.xlane.f32.xlu0 %v87_v43  ;;  %79 = vadd.xlane.f32.xlu1 %v78_v41 }
  0xa6   :  { %91 = vadd.xlane.f32.xlu1 %v90_v44 }
 0x127   :  { %v83_v48 = vpop.xlane.xlu0 %82 }
 0x128   :  { %v95_v49 = vmul.f32 0.03125, %v83_v48 }
 0x12a   :  { %v101_v50 = vadd.f32 1e-06, %v95_v49 }
 0x12b   :  { %v77_v51 = vpop.xlane.xlu0 %76  ;;  %v86_v52 = vpop.xlane.xlu1 %85 }
 0x12c   :  { %340 = vrsqrt.f32 %v101_v50  ;;  %v93_v53 = vmul.f32 0.03125, %v77_v51  ;;  %v96_v54 = vmul.f32 0.03125, %v86_v52 }
 0x12e   :  { %v99_v55 = vadd.f32 1e-06, %v93_v53  ;;  %v102_v56 = vadd.f32 1e-06, %v96_v54 }
 0x12f   :  { %v89_v57 = vpop.xlane.xlu0 %88  ;;  %v80_v58 = vpop.xlane.xlu1 %79 }
 0x130   :  { %342 = vrsqrt.f32 %v99_v55  ;;  %v97_v59 = vmul.f32 0.03125, %v89_v57  ;;  %v94_v60 = vmul.f32 0.03125, %v80_v58 }
 0x131   :  { %344 = vrsqrt.f32 %v102_v56 }
 0x132   :  { %v103_v61 = vadd.f32 1e-06, %v97_v59  ;;  %v100_v62 = vadd.f32 1e-06, %v94_v60 }
 0x133   :  { %v92_v63 = vpop.xlane.xlu1 %91 }
 0x134   :  { %346 = vrsqrt.f32 %v103_v61  ;;  %v98_v0 = vmul.f32 0.03125, %v92_v63 }
 0x135   :  { %348 = vrsqrt.f32 %v100_v62 }
 0x136   :  { %v341_v1 = vpop.eup %340  ;;  %v104_v2 = vadd.f32 1e-06, %v98_v0 }
 0x137   :  { %v113_v3 = vmul.f32 %v341_v1, %v399_v19 }
 0x138   :  { %350 = vrsqrt.f32 %v104_v2 }
 0x139   :  { %v126_v7 = vmul.f32 %v277_v4, %v113_v3 }
 0x13a   :  { %v343_v5 = vpop.eup %342 }
 0x13b   :  { %v345_v6 = vpop.eup %344  ;;  %v111_v8 = vmul.f32 %v343_v5, %v401_v20  ;;  %v139_v15 = vadd.f32 %v278_v10, %v126_v7 }
 0x13c   :  { %v114_v9 = vmul.f32 %v345_v6, %v407_v27 }
 0x13d   :  { %v124_v16 = vmul.f32 %v277_v4, %v111_v8 }
 0x13e   :  { %v347_v11 = vpop.eup %346  ;;  %v127_v12 = vmul.f32 %v277_v4, %v114_v9 }
 0x13f   :  { %v349_v13 = vpop.eup %348  ;;  %v115_v14 = vmul.f32 %v347_v11, %v417_v37  ;;  %v137_v24 = vadd.f32 %v278_v10, %v124_v16 }
 0x140   :  { %v140_v17 = vadd.f32 %v278_v10, %v127_v12  ;;  %v112_v18 = vmul.f32 %v349_v13, %v410_v29 }
 0x141   :  { %v128_v20 = vmul.f32 %v277_v4, %v115_v14 }
 0x142   :  { %v351_v19 = vpop.eup %350  ;;  %v144_v21 = vpack.c.bf16 %v140_v17, %v139_v15  ;;  %v125_v22 = vmul.f32 %v277_v4, %v112_v18 }
 0x143   :  { %v116_v23 = vmul.f32 %v351_v19, %v420_v39  ;;  %v141_v28 = vadd.f32 %v278_v10, %v128_v20 }
 0x144   :  { %147 = vst.msk [vmem:[#allocation2 + $0x8] sm:$0xff] %vm37_vm0, %v144_v21  ;;  %v138_v25 = vadd.f32 %v278_v10, %v125_v22 }
 0x145   :  { %v129_v26 = vmul.f32 %v277_v4, %v116_v23 }
 0x146   :  { %v143_v27 = vpack.c.bf16 %v138_v25, %v137_v24 }
 0x147   :  { %v142_v30 = vadd.f32 %v278_v10, %v129_v26 }
 0x148   :  { %146 = vst.msk [vmem:[#allocation2] sm:$0xff] %vm37_vm0, %v143_v27 }
 0x149   :  { %v145_v31 = vpack.c.bf16 %v142_v30, %v141_v28 }
 0x14b   :  { %148 = vst.msk [vmem:[#allocation2 + $0x10] sm:$0xff] %vm37_vm0, %v145_v31  ;;  %v150_v29 = vld [vmem:[#allocation2 + $0x8] sm:$0xff] }
 0x14c   :  { %325 = vmatmul.mubr.msk.bf16.vlgmr.msra.gmra.mrb[0].mxu1 %vm37_vm0, %v150_v29 }
 0x14d   :  { %328 = vmatprep.mubr.msk.bf16.mxu1 %vm353_vm1, %v352_v46 }
 0x14f   :  { %v149_v32 = vld [vmem:[#allocation2] sm:$0xff] }
 0x150   :  { %321 = vmatmul.mubr.msk.bf16.vlgmr.msra.gmra.mrb[0].mxu0 %vm37_vm0, %v149_v32 }
 0x152   :  { %v151_v33 = vld [vmem:[#allocation2 + $0x10] sm:$0xff] }
 0x154   :  { %329 = vmatmul.mubr.msk.bf16.gmra.mrb[4].mxu1 %vm37_vm0, %v151_v33 }
 0x21f   :  { %v227_v35 = vpop.f32.mrb[0].mxu1 }
 0x220   :  { %v228_v36 = vadd.f32 %v279_v34, %v227_v35  ;;  %v326_v37 = vpop.f32.mrb[1].mxu1 }
 0x221   :  { %v230_v38 = vpop.f32.mrb[2].mxu1 }
 0x222   :  { %v293_v39 = vpack.c.bf16 %v228_v36, %v228_v36  ;;  %v231_v40 = vadd.f32 %v279_v34, %v230_v38  ;;  %v327_v41 = vpop.f32.mrb[3].mxu1 }
 0x223   :  { %v219_v42 = vpop.f32.mrb[0].mxu0 }
 0x224   :  { %269 = vst.msk [vmem:[%s495_s5 + $0x8] sm:$0xf] %vm266_vm2, %v293_v39  ;;  %v294_v43 = vpack.c.bf16 %v231_v40, %v231_v40  ;;  %v220_v44 = vadd.f32 %v279_v34, %v219_v42  ;;  %v322_v45 = vpop.f32.mrb[1].mxu0 }
 0x225   :  { %v222_v46 = vpop.f32.mrb[2].mxu0 }
 0x226   :  { %270 = vst.msk [vmem:[%s495_s5 + $0xc] sm:$0xf] %vm266_vm2, %v294_v43  ;;  %v291_v47 = vpack.c.bf16 %v220_v44, %v220_v44  ;;  %v223_v48 = vadd.f32 %v279_v34, %v222_v46  ;;  %v323_v49 = vpop.f32.mrb[3].mxu0 }
 0x227   :  { %v235_v50 = vpop.f32.mrb[4].mxu1 }
 0x228   :  { %267 = vst.msk [vmem:[%s495_s5] sm:$0xf] %vm266_vm2, %v291_v47  ;;  %v292_v51 = vpack.c.bf16 %v223_v48, %v223_v48  ;;  %v236_v52 = vadd.f32 %v279_v34, %v235_v50  ;;  %v330_v53 = vpop.f32.mrb[5].mxu1 }
 0x229   :  { %v238_v54 = vpop.f32.mrb[6].mxu1 }
 0x22a   :  { %268 = vst.msk [vmem:[%s495_s5 + $0x4] sm:$0xf] %vm266_vm2, %v292_v51  ;;  %v295_v55 = vpack.c.bf16 %v236_v52, %v236_v52  ;;  %v239_v56 = vadd.f32 %v279_v34, %v238_v54  ;;  %v331_v57 = vpop.f32.mrb[7].mxu1 }
 0x22c   :  { %271 = vst.msk [vmem:[%s495_s5 + $0x10] sm:$0xf] %vm266_vm2, %v295_v55  ;;  %v296_v58 = vpack.c.bf16 %v239_v56, %v239_v56 }
 0x22e   :  { %272 = vst.msk [vmem:[%s495_s5 + $0x14] sm:$0xf] %vm266_vm2, %v296_v58 }

// kernel: vit_forward.13
= control target key start
LH: loop header
LB: loop body
LE: loop exit
PB: predicated region body
PF: predicated region fallthrough
CT: control target
= control target key end

     0   :  { %vm37_vm0 = vcmask 261120   ;;  %v410_v46 = vmov 0.0   ;;  %vm411_vm1 = vmmov 0   ;;  %s533_s0 = inlined_call_operand.vmem [shape: bf16[48,32], index: 0, kind: input, shape index: {}]   ;;  %s534_s3 = inlined_call_operand.vmem [shape: bf16[32,128], index: 3, kind: input, shape index: {}]   ;;  %s535_s1 = inlined_call_operand.vmem [shape: f32[1,32], index: 1, kind: input, shape index: {}]   ;;  %s536_s2 = inlined_call_operand.vmem [shape: f32[1,32], index: 2, kind: input, shape index: {}]   ;;  %s537_s4 = inlined_call_operand.vmem [shape: f32[1,128], index: 4, kind: input, shape index: {}]   ;;  %s538_s5 = inlined_call_operand.vmem [shape: bf16[48,128], index: 5, kind: output, shape index: {}]  }
   0x1   :  { %v353_v0 = vld [vmem:[%s533_s0 + $0x8] sm:$0xff]   ;;  %v327_v1 = vld [vmem:[%s533_s0] sm:$0xff]   ;;  %v354_v5 = vld [vmem:[%s533_s0 + $0x10] sm:$0xff]   ;;  %378 = vmatprep.subr.bf16.mxu1 %v410_v46  ;;  %362 = vmatprep.subr.bf16.mxu0 %v410_v46 }
   0x2   :  { %v332_v2 = vunpack.c.l.bf16 %v353_v0  ;;  %v333_v3 = vunpack.c.h.bf16 %v353_v0  ;;  %v328_v4 = vunpack.c.l.bf16 %v327_v1  ;;  %v329_v6 = vunpack.c.h.bf16 %v327_v1  ;;  %v384_v45 = vld [vmem:[%s534_s3] sm:$0xff]   ;;  %v385_v47 = vld [vmem:[%s534_s3 + $0x8] sm:$0xff]   ;;  %370 = vmatprep.mubr.msk.bf16.mxu1 %vm411_vm1, %v410_v46  ;;  %366 = vmatprep.mubr.msk.bf16.mxu0 %vm411_vm1, %v410_v46 }
   0x3   :  { %v336_v10 = vunpack.c.l.bf16 %v354_v5  ;;  %v337_v12 = vunpack.c.h.bf16 %v354_v5  ;;  %380 = vmatpush3.bf16.msra.mxu1 %v384_v45  ;;  %363 = vmatpush3.bf16.msra.mxu0 %v384_v45 }
   0x4   :  { %v44_v7 = vsel %vm37_vm0, %v332_v2, 0.0  ;;  %v38_v8 = vsel %vm37_vm0, %v328_v4, 0.0  ;;  %v47_v9 = vsel %vm37_vm0, %v333_v3, 0.0  ;;  %v41_v11 = vsel %vm37_vm0, %v329_v6, 0.0  ;;  %379 = vmatprep.subr.bf16.mxu1 %v410_v46  ;;  %364 = vmatprep.subr.bf16.mxu0 %v410_v46 }
   0x5   :  { %45 = vadd.xlane.f32.xlu0 %v44_v7  ;;  %39 = vadd.xlane.f32.xlu1 %v38_v8  ;;  %v50_v13 = vsel %vm37_vm0, %v336_v10, 0.0  ;;  %v53_v14 = vsel %vm37_vm0, %v337_v12, 0.0 }
   0x7   :  { %381 = vmatpush3.bf16.msra.mxu1 %v385_v47  ;;  %365 = vmatpush3.bf16.msra.mxu0 %v385_v47 }
   0x9   :  { %48 = vadd.xlane.f32.xlu0 %v47_v9  ;;  %42 = vadd.xlane.f32.xlu1 %v41_v11 }
   0xd   :  { %51 = vadd.xlane.f32.xlu0 %v50_v13  ;;  %54 = vadd.xlane.f32.xlu1 %v53_v14 }
  0x92   :  { %v46_v15 = vpop.xlane.xlu0 %45  ;;  %v40_v16 = vpop.xlane.xlu1 %39 }
  0x93   :  { %v59_v17 = vmul.f32 0.03125, %v46_v15  ;;  %v57_v18 = vmul.f32 0.03125, %v40_v16 }
  0x95   :  { %v457_v19 = vsub.f32 %v332_v2, %v59_v17  ;;  %v459_v20 = vsub.f32 %v328_v4, %v57_v18  ;;  %v306_v4 = vld [vmem:[%s535_s1] ss:$0 sm:$0xff] }
  0x96   :  { %v49_v21 = vpop.xlane.xlu0 %48  ;;  %v43_v22 = vpop.xlane.xlu1 %42 }
  0x97   :  { %v60_v23 = vmul.f32 0.03125, %v49_v21  ;;  %v71_v24 = vmul.f32 %v457_v19, %v457_v19  ;;  %v58_v25 = vmul.f32 0.03125, %v43_v22  ;;  %v69_v26 = vmul.f32 %v459_v20, %v459_v20 }
  0x99   :  { %v465_v27 = vsub.f32 %v333_v3, %v60_v23  ;;  %v81_v28 = vsel %vm37_vm0, %v71_v24, 0.0  ;;  %v468_v29 = vsub.f32 %v329_v6, %v58_v25  ;;  %v75_v31 = vsel %vm37_vm0, %v69_v26, 0.0 }
  0x9a   :  { %82 = vadd.xlane.f32.xlu0 %v81_v28  ;;  %v52_v30 = vpop.xlane.xlu0 %51  ;;  %v55_v32 = vpop.xlane.xlu1 %54 }
  0x9b   :  { %v61_v33 = vmul.f32 0.03125, %v52_v30  ;;  %v72_v34 = vmul.f32 %v465_v27, %v465_v27  ;;  %v62_v35 = vmul.f32 0.03125, %v55_v32  ;;  %v70_v36 = vmul.f32 %v468_v29, %v468_v29 }
  0x9d   :  { %v475_v37 = vsub.f32 %v336_v10, %v61_v33  ;;  %v84_v38 = vsel %vm37_vm0, %v72_v34, 0.0  ;;  %v478_v39 = vsub.f32 %v337_v12, %v62_v35  ;;  %v78_v41 = vsel %vm37_vm0, %v70_v36, 0.0  ;;  %v307_v10 = vld [vmem:[%s536_s2] ss:$0 sm:$0xff] }
  0x9e   :  { %85 = vadd.xlane.f32.xlu1 %v84_v38  ;;  %76 = vadd.xlane.f32.xlu0 %v75_v31  ;;  %v308_v34 = vld [vmem:[%s537_s4] ss:$0 sm:$0xff] }
  0x9f   :  { %v73_v40 = vmul.f32 %v475_v37, %v475_v37  ;;  %v74_v42 = vmul.f32 %v478_v39, %v478_v39 }
  0xa1   :  { %v87_v43 = vsel %vm37_vm0, %v73_v40, 0.0  ;;  %v90_v44 = vsel %vm37_vm0, %v74_v42, 0.0 }
  0xa2   :  { %88 = vadd.xlane.f32.xlu0 %v87_v43  ;;  %79 = vadd.xlane.f32.xlu1 %v78_v41 }
  0xa6   :  { %91 = vadd.xlane.f32.xlu1 %v90_v44 }
 0x127   :  { %v83_v48 = vpop.xlane.xlu0 %82 }
 0x128   :  { %v95_v49 = vmul.f32 0.03125, %v83_v48 }
 0x12a   :  { %v101_v50 = vadd.f32 1e-06, %v95_v49 }
 0x12b   :  { %v77_v51 = vpop.xlane.xlu0 %76  ;;  %v86_v52 = vpop.xlane.xlu1 %85 }
 0x12c   :  { %386 = vrsqrt.f32 %v101_v50  ;;  %v93_v53 = vmul.f32 0.03125, %v77_v51  ;;  %v96_v54 = vmul.f32 0.03125, %v86_v52 }
 0x12e   :  { %v99_v55 = vadd.f32 1e-06, %v93_v53  ;;  %v102_v56 = vadd.f32 1e-06, %v96_v54 }
 0x12f   :  { %v89_v57 = vpop.xlane.xlu0 %88  ;;  %v80_v58 = vpop.xlane.xlu1 %79 }
 0x130   :  { %388 = vrsqrt.f32 %v99_v55  ;;  %v97_v59 = vmul.f32 0.03125, %v89_v57  ;;  %v94_v60 = vmul.f32 0.03125, %v80_v58 }
 0x131   :  { %390 = vrsqrt.f32 %v102_v56 }
 0x132   :  { %v103_v61 = vadd.f32 1e-06, %v97_v59  ;;  %v100_v62 = vadd.f32 1e-06, %v94_v60 }
 0x133   :  { %v92_v63 = vpop.xlane.xlu1 %91 }
 0x134   :  { %392 = vrsqrt.f32 %v103_v61  ;;  %v98_v0 = vmul.f32 0.03125, %v92_v63 }
 0x135   :  { %394 = vrsqrt.f32 %v100_v62 }
 0x136   :  { %v387_v1 = vpop.eup %386  ;;  %v104_v2 = vadd.f32 1e-06, %v98_v0 }
 0x137   :  { %v113_v3 = vmul.f32 %v387_v1, %v457_v19 }
 0x138   :  { %396 = vrsqrt.f32 %v104_v2 }
 0x139   :  { %v126_v7 = vmul.f32 %v306_v4, %v113_v3 }
 0x13a   :  { %v389_v5 = vpop.eup %388 }
 0x13b   :  { %v391_v6 = vpop.eup %390  ;;  %v111_v8 = vmul.f32 %v389_v5, %v459_v20  ;;  %v139_v15 = vadd.f32 %v307_v10, %v126_v7 }
 0x13c   :  { %v114_v9 = vmul.f32 %v391_v6, %v465_v27 }
 0x13d   :  { %v124_v16 = vmul.f32 %v306_v4, %v111_v8 }
 0x13e   :  { %v393_v11 = vpop.eup %392  ;;  %v127_v12 = vmul.f32 %v306_v4, %v114_v9 }
 0x13f   :  { %v395_v13 = vpop.eup %394  ;;  %v115_v14 = vmul.f32 %v393_v11, %v475_v37  ;;  %v137_v24 = vadd.f32 %v307_v10, %v124_v16 }
 0x140   :  { %v140_v17 = vadd.f32 %v307_v10, %v127_v12  ;;  %v112_v18 = vmul.f32 %v395_v13, %v468_v29 }
 0x141   :  { %v128_v20 = vmul.f32 %v306_v4, %v115_v14 }
 0x142   :  { %v397_v19 = vpop.eup %396  ;;  %v144_v21 = vpack.c.bf16 %v140_v17, %v139_v15  ;;  %v125_v22 = vmul.f32 %v306_v4, %v112_v18 }
 0x143   :  { %v116_v23 = vmul.f32 %v397_v19, %v478_v39  ;;  %v141_v28 = vadd.f32 %v307_v10, %v128_v20 }
 0x144   :  { %147 = vst.msk [vmem:[#allocation2 + $0x8] sm:$0xff] %vm37_vm0, %v144_v21  ;;  %v138_v25 = vadd.f32 %v307_v10, %v125_v22 }
 0x145   :  { %v129_v26 = vmul.f32 %v306_v4, %v116_v23 }
 0x146   :  { %v143_v27 = vpack.c.bf16 %v138_v25, %v137_v24 }
 0x147   :  { %v142_v30 = vadd.f32 %v307_v10, %v129_v26 }
 0x148   :  { %146 = vst.msk [vmem:[#allocation2] sm:$0xff] %vm37_vm0, %v143_v27 }
 0x149   :  { %v145_v31 = vpack.c.bf16 %v142_v30, %v141_v28 }
 0x14b   :  { %148 = vst.msk [vmem:[#allocation2 + $0x10] sm:$0xff] %vm37_vm0, %v145_v31  ;;  %v150_v29 = vld [vmem:[#allocation2 + $0x8] sm:$0xff] }
 0x14c   :  { %371 = vmatmul.mubr.msk.bf16.vlgmr.msra.gmra.mrb[0].mxu1 %vm37_vm0, %v150_v29 }
 0x14d   :  { %374 = vmatprep.mubr.msk.bf16.mxu1 %vm411_vm1, %v410_v46 }
 0x14f   :  { %v149_v32 = vld [vmem:[#allocation2] sm:$0xff] }
 0x150   :  { %367 = vmatmul.mubr.msk.bf16.vlgmr.msra.gmra.mrb[0].mxu0 %vm37_vm0, %v149_v32 }
 0x152   :  { %v151_v33 = vld [vmem:[#allocation2 + $0x10] sm:$0xff] }
 0x154   :  { %375 = vmatmul.mubr.msk.bf16.gmra.mrb[4].mxu1 %vm37_vm0, %v151_v33 }
 0x21f   :  { %v227_v35 = vpop.f32.mrb[0].mxu1 }
 0x220   :  { %v228_v36 = vadd.f32 %v308_v34, %v227_v35  ;;  %v372_v37 = vpop.f32.mrb[1].mxu1 }
 0x221   :  { %v230_v38 = vpop.f32.mrb[2].mxu1 }
 0x222   :  { %v250_v39 = vmul.f32 0.70710677, %v228_v36  ;;  %v231_v40 = vadd.f32 %v308_v34, %v230_v38  ;;  %v373_v41 = vpop.f32.mrb[3].mxu1  ;;  %v244_v62 = vmul.f32 0.5, %v228_v36 }
 0x223   :  { %v219_v42 = vpop.f32.mrb[0].mxu0 }
 0x224   :  { %398 = verf.f32 %v250_v39  ;;  %v251_v43 = vmul.f32 0.70710677, %v231_v40  ;;  %v220_v44 = vadd.f32 %v308_v34, %v219_v42  ;;  %v368_v45 = vpop.f32.mrb[1].mxu0  ;;  %v245_v63 = vmul.f32 0.5, %v231_v40 }
 0x225   :  { %v222_v46 = vpop.f32.mrb[2].mxu0 }
 0x226   :  { %400 = verf.f32 %v251_v43  ;;  %v248_v47 = vmul.f32 0.70710677, %v220_v44  ;;  %v223_v48 = vadd.f32 %v308_v34, %v222_v46  ;;  %v369_v49 = vpop.f32.mrb[3].mxu0  ;;  %v242_v7 = vmul.f32 0.5, %v220_v44 }
 0x227   :  { %v235_v50 = vpop.f32.mrb[4].mxu1 }
 0x228   :  { %402 = verf.f32 %v248_v47  ;;  %v249_v51 = vmul.f32 0.70710677, %v223_v48  ;;  %v236_v52 = vadd.f32 %v308_v34, %v235_v50  ;;  %v376_v53 = vpop.f32.mrb[5].mxu1  ;;  %v243_v8 = vmul.f32 0.5, %v223_v48 }
 0x229   :  { %v238_v54 = vpop.f32.mrb[6].mxu1 }
 0x22a   :  { %404 = verf.f32 %v249_v51  ;;  %v252_v55 = vmul.f32 0.70710677, %v236_v52  ;;  %v239_v56 = vadd.f32 %v308_v34, %v238_v54  ;;  %v377_v57 = vpop.f32.mrb[7].mxu1  ;;  %v246_v16 = vmul.f32 0.5, %v236_v52 }
 0x22c   :  { %406 = verf.f32 %v252_v55  ;;  %v253_v58 = vmul.f32 0.70710677, %v239_v56  ;;  %v247_v17 = vmul.f32 0.5, %v239_v56 }
 0x22e   :  { %v399_v59 = vpop.eup %398  ;;  %408 = verf.f32 %v253_v58 }
 0x22f   :  { %v262_v60 = vadd.f32 1.0, %v399_v59 }
 0x230   :  { %v401_v61 = vpop.eup %400 }
 0x231   :  { %v263_v0 = vadd.f32 1.0, %v401_v61  ;;  %v268_v2 = vmul.f32 %v262_v60, %v244_v62 }
 0x232   :  { %v403_v1 = vpop.eup %402 }
 0x233   :  { %v269_v3 = vmul.f32 %v263_v0, %v245_v63  ;;  %v260_v4 = vadd.f32 1.0, %v403_v1 }
 0x234   :  { %v405_v5 = vpop.eup %404 }
 0x235   :  { %v346_v6 = vpack.c.bf16 %v269_v3, %v268_v2  ;;  %v261_v9 = vadd.f32 1.0, %v405_v5  ;;  %v266_v11 = vmul.f32 %v260_v4, %v242_v7 }
 0x236   :  { %v407_v10 = vpop.eup %406 }
 0x237   :  { %355 = vst [vmem:[%s538_s5 + $0x8] sm:$0xff] %v346_v6   ;;  %v267_v12 = vmul.f32 %v261_v9, %v243_v8  ;;  %v264_v13 = vadd.f32 1.0, %v407_v10 }
 0x238   :  { %v409_v14 = vpop.eup %408 }
 0x239   :  { %v341_v15 = vpack.c.bf16 %v267_v12, %v266_v11  ;;  %v265_v18 = vadd.f32 1.0, %v409_v14  ;;  %v270_v19 = vmul.f32 %v264_v13, %v246_v16 }
 0x23b   :  { %342 = vst [vmem:[%s538_s5] sm:$0xff] %v341_v15   ;;  %v271_v21 = vmul.f32 %v265_v18, %v247_v17 }
 0x23d   :  { %v351_v22 = vpack.c.bf16 %v271_v21, %v270_v19 }
 0x23f   :  { %356 = vst [vmem:[%s538_s5 + $0x10] sm:$0xff] %v351_v22  }

// kernel: vit_forward.12
= control target key start
LH: loop header
LB: loop body
LE: loop exit
PB: predicated region body
PF: predicated region fallthrough
CT: control target
= control target key end

     0   :  { %s1526_s15 = smov 0   ;;  %s1720_s0 = inlined_call_operand.vmem [shape: bf16[48,96], index: 0, kind: input, shape index: {}]   ;;  %s1721_s1 = inlined_call_operand.vmem [shape: bf16[32,32], index: 1, kind: input, shape index: {}]   ;;  %s1722_s2 = inlined_call_operand.vmem [shape: f32[1,32], index: 2, kind: input, shape index: {}]   ;;  %s1723_s3 = inlined_call_operand.vmem [shape: bf16[48,32], index: 3, kind: input, shape index: {}]   ;;  %s1724_s4 = inlined_call_operand.vmem [shape: bf16[48,32], index: 4, kind: output, shape index: {}]  }
   0x1 LB: > { %s1200_s16 = sadd.s32 4294967295, %s1484_s15   ;;  %p1204_p0 = scmp.ge.s32.totalorder %s1484_s15, 1  ;;  %s1484_s15 = sphi %s1526_s15, %s14_s15  }
   0x2   : > { %p174_p1 = scmp.lt.s32.totalorder %s1484_s15, 3 }
   0x4   : > { %p175_p2 = pnand %p1204_p0, %p174_p1 }
   0x5   : > { %s205_s17 = smul.u32 (!%p175_p2), 3, %s1200_s16  ;;  %vm243_vm0 = vcmask (!%p175_p2), 64512   ;;  %s1486_s22 = smov (!%p175_p2), 96   ;;  %vm345_vm1 = vcmask (!%p175_p2), 1043456   ;;  %v224_v9 = vlaneseq (!%p175_p2)  ;;  %v1488_v11 = vmov (!%p175_p2), -1e+30  }
   0x6   : > { %178 = sbr.rel (%p175_p2) target bundleno = 2279 (0x8e7), region = 36  ;;  %s1487_s23 = smov (!%p175_p2), 64   ;;  %vm304_vm3 = vcmask (!%p175_p2), 195584   ;;  %vm416_vm4 = vcmask (!%p175_p2), 60416   ;;  %vm615_vm5 = vcmask (!%p175_p2), 126016   ;;  %vm814_vm6 = vcmask (!%p175_p2), 191616  }
   0x7   : > { %p206_p3 = scmp.lt.s32.totalorder (!%p175_p2), %s205_s17, 5  ;;  %v225_v10 = vand.u32 (!%p175_p2), 127, %v224_v9  ;;  %s1489_s24 = smov (!%p175_p2), 88   ;;  %vm1013_vm7 = vcmask (!%p175_p2), 257216   ;;  %vm1051_vm8 = vcmask (!%p175_p2), 261120   ;;  %vm1128_vm9 = vcmask (!%p175_p2), 257024  }
   0x8   : > { %s1490_s25 = smov (!%p175_p2), 120   ;;  %s1491_s26 = smov (!%p175_p2), 56  }
   0x9   : > { %vm226_vm2 = vcmp.lt.s32.totalorder (!%p175_p2), %v225_v10, 17  ;;  %s1492_s27 = smov (!%p175_p2), 80   ;;  %s1493_s28 = smov (!%p175_p2), 112  }
   0xa   : > { %v1552_v12 = vsel (!%p175_p2), %vm226_vm2, 0.0, %v1488_v11  ;;  %s1494_s29 = smov (!%p175_p2), 48   ;;  %s1495_s30 = smov (!%p175_p2), 72  }
   0xb   : > { %s1496_s5 = smov (!%p175_p2), 104   ;;  %s1497_s6 = smov (!%p175_p2), 40  }
   0xc   : > { %s1498_s7 = smov (!%p175_p2), 8   ;;  %s1499_s8 = smov (!%p175_p2), 16  }
   0xd   : > { %s1726_s17 = smov (!%p206_p3, %s205_s17), 5  ;;  %s1500_s13 = smov 24  }
   0xe   : > { %s1534_s18 = sshll.u32 %s1726_s17, 2 }
   0xf   : > { %s1540_s21 = scalar_lea.vmem %s1720_s0, %s1534_s18  ;;  %s215_s17 = scalar_lea.vmem %s1723_s3, %s1534_s18 }
  0x10   : > { %v1418_v0 = vld [vmem:[%s1540_s21] sm:$0xff]   ;;  %v1419_v1 = vld [vmem:[%s1540_s21 + $0x8] ss:$0 sps:$4 sm:$0xff]  }
  0x11   : > { %239 = vrot.lane.b32.xlu0 %v1418_v0, %s1486_s22  ;;  %1315 = vmatprep.mubr.msk.bf16.mxu0 %vm243_vm0, %v1418_v0  ;;  %v1420_v23 = vld [vmem:[%s1540_s21] sm:$0xff]   ;;  %v1562_v24 = vld [vmem:[%s1540_s21 + $0x8] ss:$0 sps:$4 sm:$0xff]  }
  0x12   : > { %334 = vrot.lane.b32.xlu1 %v1418_v0, %s1487_s23  ;;  %v1598_v60 = vld [vmem:[%s1540_s21] sm:$0xff]   ;;  %v1423_v61 = vld [vmem:[%s1540_s21 + $0x8] ss:$0 sps:$4 sm:$0xff]  }
  0x15   : > { %241 = vrot.lane.b32.xlu0 %v1419_v1, %s1486_s22 }
  0x16   : > { %336 = vrot.lane.b32.xlu1 %v1419_v1, %s1487_s23  ;;  %s221_s23 = scalar_lea.vmem %s1724_s4, %s1534_s18 }
  0x83   : > { %v240_v2 = vpop.permute.xlu0 %239 }
  0x84   : > { %1383 = vmatprep.subr.msk.bf16.mxu0 %vm243_vm0, %v240_v2  ;;  %v251_v3 = vsel %vm243_vm0, %v240_v2, 0  ;;  %v335_v6 = vpop.permute.xlu1 %334 }
  0x85   : > { %1312 = vmatpush3.bf16.xpose.msra.mxu0 %v251_v3  ;;  %1319 = vmatprep.subr.bf16.mxu1 %v335_v6 }
  0x86   : > { %1320 = vmatpush3.bf16.msra.mxu1 %v335_v6 }
  0x87   : > { %v242_v4 = vpop.permute.xlu0 %241 }
  0x88   : > { %1384 = vmatprep.subr.msk.bf16.mxu0 %vm243_vm0, %v242_v4  ;;  %v254_v5 = vsel %vm243_vm0, %v242_v4, 0  ;;  %v337_v7 = vpop.permute.xlu1 %336 }
  0x89   : > { %1385 = vmatprep.subr.msk.bf16.mxu1 %vm345_vm1, %v337_v7  ;;  %v347_v8 = vsel %vm345_vm1, %v337_v7, 0 }
  0x8a   : > { %1322 = vmatpush3.bf16.msra.mxu1 %v347_v8 }
  0x8d   : > { %1314 = vmatpush3.bf16.xpose.msra.mxu0 %v254_v5 }
  0x94   : > { %1316 = vmatmul.mubr.msk.bf16.vlgmr.msra.gmra.mrb[0].mxu0 %vm243_vm0, %v1419_v1 }
 0x167   : > { %v1317_v13 = vpop.f32.mrb[0].mxu0 }
 0x168   : > { %v299_v14 = vadd.f32 %v1317_v13, %v1552_v12  ;;  %v290_v15 = vpop.f32.mrb[1].mxu0 }
 0x169   : > { %v291_v16 = vadd.f32 %v290_v15, %v1552_v12  ;;  %v1318_v17 = vpop.f32.mrb[2].mxu0 }
 0x16a   : > { %v293_v18 = vpop.f32.mrb[3].mxu0  ;;  %v311_v19 = vsel %vm304_vm3, %v299_v14, -inf }
 0x16b   : > { %v294_v20 = vadd.f32 %v293_v18, %v1552_v12  ;;  %312 = vmax.xlane.f32.xlu0 %v311_v19  ;;  %v305_v21 = vsel %vm304_vm3, %v291_v16, -inf }
 0x16c   : > { %306 = vmax.xlane.f32.xlu1 %v305_v21 }
 0x16d   : > { %v308_v22 = vsel %vm304_vm3, %v294_v20, -inf }
 0x170   : > { %309 = vmax.xlane.f32.xlu1 %v308_v22 }
 0x181   : > { %435 = vrot.lane.b32.xlu1 %v1420_v23, %s1489_s24  ;;  %433 = vrot.lane.b32.xlu0 %v1562_v24, %s1490_s25 }
 0x185   : > { %437 = vrot.lane.b32.xlu1 %v1562_v24, %s1489_s24 }
 0x189   : > { %431 = vrot.lane.b32.xlu1 %v1420_v23, %s1490_s25 }
 0x18d   : > { %528 = vrot.lane.b32.xlu1 %v1420_v23, %s1491_s26 }
 0x1f8   : > { %v313_v25 = vpop.xlane.xlu0 %312 }
 0x1f9   : > { %v316_v26 = vsub.f32 %v299_v14, %v313_v25  ;;  %v307_v27 = vpop.xlane.xlu1 %306 }
 0x1fa   : > { %v314_v28 = vsub.f32 %v291_v16, %v307_v27 }
 0x1fb   : > { %v321_v29 = vmul.f32 1.442695, %v316_v26 }
 0x1fc   : > { %v317_v30 = vmul.f32 1.442695, %v314_v28  ;;  %v434_v44 = vpop.permute.xlu0 %433 }
 0x1fd   : > { %v310_v31 = vpop.xlane.xlu1 %309  ;;  %1430 = vpow2.f32 %v321_v29 }
 0x1fe   : > { %v315_v32 = vsub.f32 %v294_v20, %v310_v31  ;;  %1432 = vpow2.f32 %v317_v30 }
 0x200   : > { %v319_v33 = vmul.f32 1.442695, %v315_v32 }
 0x201   : > { %v436_v34 = vpop.permute.xlu1 %435 }
 0x202   : > { %1434 = vpow2.f32 %v319_v33  ;;  %1386 = vmatprep.subr.msk.bf16.mxu1 %vm243_vm0, %v436_v34  ;;  %v446_v40 = vsel %vm243_vm0, %v436_v34, 0 }
 0x205   : > { %v438_v36 = vpop.permute.xlu1 %437 }
 0x206   : > { %v449_v43 = vsel %vm243_vm0, %v438_v36, 0 }
 0x207   : > { %v1568_v35 = vpop.eup %1430 }
 0x208   : > { %v1570_v37 = vpop.eup %1432  ;;  %v333_v41 = vpack.c.bf16 %v1568_v35, %v1568_v35 }
 0x209   : > { %v432_v42 = vpop.permute.xlu1 %431 }
 0x20c   : > { %v1572_v38 = vpop.eup %1434 }
 0x20d   : > { %v332_v39 = vpack.c.bf16 %v1572_v38, %v1570_v37  ;;  %v529_v45 = vpop.permute.xlu1 %528 }
 0x20e   : > { %1335 = vmatprep.subr.bf16.mxu0 %v529_v45 }
 0x20f   : > { %1323 = vmatprep.mubr.msk.bf16.mxu1 %vm304_vm3, %v332_v39  ;;  %1336 = vmatpush3.bf16.msra.mxu0 %v529_v45  ;;  %v1425_v39 = vld [vmem:[%s1540_s21 + $0x8] ss:$0 sps:$4 sm:$0xff]  }
 0x210   : > { %1324 = vmatmul.mubr.msk.bf16.vlgmr.msra.gmra.mrb[0].mxu1 %vm304_vm3, %v333_v41 }
 0x211   : > { %1328 = vmatpush3.bf16.xpose.msra.mxu1 %v446_v40  ;;  %1331 = vmatprep.mubr.msk.bf16.mxu1 %vm243_vm0, %v432_v42 }
 0x212   : > { %1387 = vmatprep.subr.msk.bf16.mxu1 %vm243_vm0, %v438_v36  ;;  %v1639_v36 = vld [vmem:[%s1540_s21] sm:$0xff]  }
 0x219   : > { %1330 = vmatpush3.bf16.xpose.msra.mxu1 %v449_v43 }
 0x220   : > { %1332 = vmatmul.mubr.msk.bf16.vlgmr.msra.gmra.mrb[4].mxu1 %vm243_vm0, %v434_v44 }
 0x2e3   : > { %v1585_v46 = vpop.f32.mrb[0].mxu1 }
 0x2e4   : > { %v1587_v47 = vpop.f32.mrb[1].mxu1 }
 0x2e5   : > { %v1326_v48 = vpop.f32.mrb[2].mxu1 }
 0x2e6   : > { %v1589_v49 = vpop.f32.mrb[3].mxu1 }
 0x2f3   : > { %v1333_v50 = vpop.f32.mrb[4].mxu1 }
 0x2f4   : > { %v494_v51 = vadd.f32 %v1333_v50, %v1552_v12  ;;  %v485_v52 = vpop.f32.mrb[5].mxu1 }
 0x2f5   : > { %v1334_v53 = vpop.f32.mrb[6].mxu1  ;;  %v486_v54 = vadd.f32 %v485_v52, %v1552_v12 }
 0x2f6   : > { %v488_v55 = vpop.f32.mrb[7].mxu1  ;;  %v505_v56 = vsel %vm304_vm3, %v494_v51, -inf }
 0x2f7   : > { %v489_v57 = vadd.f32 %v488_v55, %v1552_v12  ;;  %506 = vmax.xlane.f32.xlu1 %v505_v56  ;;  %v499_v59 = vsel %vm304_vm3, %v486_v54, -inf }
 0x2f9   : > { %v502_v58 = vsel %vm304_vm3, %v489_v57, -inf }
 0x2fa   : > { %503 = vmax.xlane.f32.xlu0 %v502_v58 }
 0x2fb   : > { %500 = vmax.xlane.f32.xlu1 %v499_v59 }
 0x30c   : > { %634 = vrot.lane.b32.xlu1 %v1598_v60, %s1492_s27 }
 0x310   : > { %530 = vrot.lane.b32.xlu0 %v1562_v24, %s1491_s26  ;;  %636 = vrot.lane.b32.xlu1 %v1423_v61, %s1492_s27 }
 0x314   : > { %630 = vrot.lane.b32.xlu1 %v1598_v60, %s1493_s28 }
 0x318   : > { %632 = vrot.lane.b32.xlu1 %v1423_v61, %s1493_s28 }
 0x31c   : > { %729 = vrot.lane.b32.xlu1 %v1423_v61, %s1494_s29 }
 0x384   : > { %v507_v62 = vpop.xlane.xlu1 %506 }
 0x385   : > { %v510_v63 = vsub.f32 %v494_v51, %v507_v62 }
 0x387   : > { %v515_v0 = vmul.f32 1.442695, %v510_v63  ;;  %v504_v1 = vpop.xlane.xlu0 %503 }
 0x388   : > { %v509_v2 = vsub.f32 %v489_v57, %v504_v1  ;;  %v501_v3 = vpop.xlane.xlu1 %500 }
 0x389   : > { %v508_v4 = vsub.f32 %v486_v54, %v501_v3  ;;  %1436 = vpow2.f32 %v515_v0 }
 0x38a   : > { %v513_v5 = vmul.f32 1.442695, %v509_v2 }
 0x38b   : > { %v511_v6 = vmul.f32 1.442695, %v508_v4  ;;  %v531_v7 = vpop.permute.xlu0 %530 }
 0x38c   : > { %1438 = vpow2.f32 %v513_v5  ;;  %v540_v8 = vsel %vm345_vm1, %v531_v7, 0  ;;  %1388 = vmatprep.subr.msk.bf16.mxu0 %vm345_vm1, %v531_v7  ;;  %v635_v9 = vpop.permute.xlu1 %634 }
 0x38d   : > { %1440 = vpow2.f32 %v511_v6  ;;  %1338 = vmatpush3.bf16.msra.mxu0 %v540_v8  ;;  %v645_v16 = vsel %vm243_vm0, %v635_v9, 0 }
 0x38e   : > { %1389 = vmatprep.subr.msk.bf16.mxu0 %vm243_vm0, %v635_v9 }
 0x390   : > { %v637_v10 = vpop.permute.xlu1 %636 }
 0x391   : > { %v648_v19 = vsel %vm243_vm0, %v637_v10, 0 }
 0x393   : > { %v1609_v11 = vpop.eup %1436 }
 0x394   : > { %v527_v17 = vpack.c.bf16 %v1609_v11, %v1609_v11  ;;  %v631_v18 = vpop.permute.xlu1 %630 }
 0x396   : > { %v1611_v13 = vpop.eup %1438 }
 0x397   : > { %v1613_v14 = vpop.eup %1440 }
 0x398   : > { %v526_v15 = vpack.c.bf16 %v1611_v13, %v1613_v14  ;;  %v633_v20 = vpop.permute.xlu1 %632 }
 0x39a   : > { %1339 = vmatprep.mubr.msk.bf16.mxu0 %vm304_vm3, %v526_v15 }
 0x39b   : > { %1340 = vmatmul.mubr.msk.bf16.vlgmr.msra.gmra.mrb[4].mxu0 %vm304_vm3, %v527_v17 }
 0x39c   : > { %1344 = vmatpush3.bf16.xpose.msra.mxu0 %v645_v16  ;;  %1347 = vmatprep.mubr.msk.bf16.mxu0 %vm243_vm0, %v631_v18  ;;  %v730_v40 = vpop.permute.xlu1 %729 }
 0x39d   : > { %1390 = vmatprep.subr.msk.bf16.mxu0 %vm243_vm0, %v637_v10  ;;  %v739_v55 = vsel %vm345_vm1, %v730_v40, 0 }
 0x3a4   : > { %1346 = vmatpush3.bf16.xpose.msra.mxu0 %v648_v19 }
 0x3ab   : > { %1348 = vmatmul.mubr.msk.bf16.vlgmr.msra.gmra.mrb[8].mxu0 %vm243_vm0, %v633_v20  ;;  %v517_v20 = vsel %vm304_vm3, %v1613_v14, 0.0 }
 0x46e   : > { %v1626_v21 = vpop.f32.mrb[4].mxu0 }
 0x46f   : > { %v1628_v22 = vpop.f32.mrb[5].mxu0 }
 0x470   : > { %v1342_v23 = vpop.f32.mrb[6].mxu0 }
 0x471   : > { %v1630_v24 = vpop.f32.mrb[7].mxu0  ;;  %v520_v23 = vsel %vm304_vm3, %v1611_v13, 0.0 }
 0x47e   : > { %v1349_v25 = vpop.f32.mrb[8].mxu0 }
 0x47f   : > { %v693_v26 = vadd.f32 %v1349_v25, %v1552_v12  ;;  %v684_v27 = vpop.f32.mrb[9].mxu0 }
 0x480   : > { %v1350_v28 = vpop.f32.mrb[10].mxu0  ;;  %v685_v29 = vadd.f32 %v684_v27, %v1552_v12 }
 0x481   : > { %v687_v30 = vpop.f32.mrb[11].mxu0  ;;  %v704_v31 = vsel %vm304_vm3, %v693_v26, -inf }
 0x482   : > { %v688_v32 = vadd.f32 %v687_v30, %v1552_v12  ;;  %705 = vmax.xlane.f32.xlu0 %v704_v31  ;;  %v698_v34 = vsel %vm304_vm3, %v685_v29, -inf }
 0x484   : > { %v701_v33 = vsel %vm304_vm3, %v688_v32, -inf }
 0x485   : > { %702 = vmax.xlane.f32.xlu1 %v701_v33 }
 0x486   : > { %699 = vmax.xlane.f32.xlu0 %v698_v34 }
 0x496   : > { %833 = vrot.lane.b32.xlu1 %v1639_v36, %s1495_s30 }
 0x49a   : > { %829 = vrot.lane.b32.xlu1 %v1639_v36, %s1496_s5 }
 0x49c   : > { %727 = vrot.lane.b32.xlu0 %v1598_v60, %s1494_s29 }
 0x4a0   : > { %835 = vrot.lane.b32.xlu0 %v1425_v39, %s1495_s30 }
 0x4a4   : > { %831 = vrot.lane.b32.xlu0 %v1425_v39, %s1496_s5 }
 0x50f   : > { %v706_v41 = vpop.xlane.xlu0 %705 }
 0x510   : > { %v709_v42 = vsub.f32 %v693_v26, %v706_v41 }
 0x512   : > { %v714_v43 = vmul.f32 1.442695, %v709_v42  ;;  %v703_v44 = vpop.xlane.xlu1 %702 }
 0x513   : > { %v708_v45 = vsub.f32 %v688_v32, %v703_v44  ;;  %v700_v48 = vpop.xlane.xlu0 %699 }
 0x514   : > { %v707_v50 = vsub.f32 %v685_v29, %v700_v48  ;;  %1442 = vpow2.f32 %v714_v43 }
 0x515   : > { %v712_v51 = vmul.f32 1.442695, %v708_v45 }
 0x516   : > { %v710_v52 = vmul.f32 1.442695, %v707_v50  ;;  %v834_v54 = vpop.permute.xlu1 %833 }
 0x517   : > { %1444 = vpow2.f32 %v712_v51  ;;  %v728_v53 = vpop.permute.xlu0 %727  ;;  %v844_v60 = vsel %vm243_vm0, %v834_v54, 0  ;;  %v323_v51 = vsel %vm304_vm3, %v1570_v37, 0.0 }
 0x518   : > { %1446 = vpow2.f32 %v710_v52  ;;  %1351 = vmatprep.subr.bf16.mxu1 %v728_v53  ;;  %v326_v52 = vsel %vm304_vm3, %v1572_v38, 0.0 }
 0x519   : > { %1352 = vmatpush3.bf16.msra.mxu1 %v728_v53  ;;  %v329_v53 = vsel %vm304_vm3, %v1568_v35, 0.0 }
 0x51a   : > { %1391 = vmatprep.subr.msk.bf16.mxu1 %vm345_vm1, %v730_v40  ;;  %v830_v62 = vpop.permute.xlu1 %829 }
 0x51b   : > { %v836_v63 = vpop.permute.xlu0 %835 }
 0x51c   : > { %v847_v0 = vsel %vm243_vm0, %v836_v63, 0 }
 0x51d   : > { %1354 = vmatpush3.bf16.msra.mxu1 %v739_v55 }
 0x51e   : > { %1392 = vmatprep.subr.msk.bf16.mxu1 %vm243_vm0, %v834_v54  ;;  %v1443_v56 = vpop.eup %1442 }
 0x51f   : > { %v726_v61 = vpack.c.bf16 %v1443_v56, %v1443_v56  ;;  %v832_v1 = vpop.permute.xlu0 %831  ;;  %v722_v27 = vsel %vm304_vm3, %v1443_v56, 0.0 }
 0x521   : > { %v1445_v57 = vpop.eup %1444 }
 0x522   : > { %v1447_v58 = vpop.eup %1446  ;;  %v719_v26 = vsel %vm304_vm3, %v1445_v57, 0.0 }
 0x523   : > { %v725_v59 = vpack.c.bf16 %v1445_v57, %v1447_v58  ;;  %v716_v25 = vsel %vm304_vm3, %v1447_v58, 0.0 }
 0x525   : > { %1355 = vmatprep.mubr.msk.bf16.mxu1 %vm304_vm3, %v725_v59 }
 0x526   : > { %1356 = vmatmul.mubr.msk.bf16.vlgmr.msra.gmra.mrb[8].mxu1 %vm304_vm3, %v726_v61 }
 0x527   : > { %1360 = vmatpush3.bf16.xpose.msra.mxu1 %v844_v60  ;;  %1363 = vmatprep.mubr.msk.bf16.mxu1 %vm243_vm0, %v830_v62 }
 0x528   : > { %1393 = vmatprep.subr.msk.bf16.mxu1 %vm243_vm0, %v836_v63 }
 0x52f   : > { %1362 = vmatpush3.bf16.xpose.msra.mxu1 %v847_v0 }
 0x536   : > { %1364 = vmatmul.mubr.msk.bf16.vlgmr.msra.gmra.mrb[12].mxu1 %vm243_vm0, %v832_v1 }
 0x5f9   : > { %v1656_v2 = vpop.f32.mrb[8].mxu1 }
 0x5fa   : > { %v1658_v3 = vpop.f32.mrb[9].mxu1 }
 0x5fb   : > { %v1358_v4 = vpop.f32.mrb[10].mxu1 }
 0x5fc   : > { %v1660_v5 = vpop.f32.mrb[11].mxu1 }
 0x609   : > { %v1365_v6 = vpop.f32.mrb[12].mxu1 }
 0x60a   : > { %v892_v7 = vadd.f32 %v1365_v6, %v1552_v12  ;;  %v883_v8 = vpop.f32.mrb[13].mxu1 }
 0x60b   : > { %v884_v9 = vadd.f32 %v883_v8, %v1552_v12  ;;  %v1366_v10 = vpop.f32.mrb[14].mxu1 }
 0x60c   : > { %v886_v15 = vpop.f32.mrb[15].mxu1  ;;  %v903_v16 = vsel %vm304_vm3, %v892_v7, -inf }
 0x60d   : > { %v887_v17 = vadd.f32 %v886_v15, %v1552_v12  ;;  %904 = vmax.xlane.f32.xlu0 %v903_v16  ;;  %v897_v18 = vsel %vm304_vm3, %v884_v9, -inf  ;;  %v523_v12 = vsel %vm304_vm3, %v1609_v11, 0.0 }
 0x60e   : > { %898 = vmax.xlane.f32.xlu1 %v897_v18 }
 0x60f   : > { %v900_v19 = vsel %vm304_vm3, %v887_v17, -inf }
 0x611   : > { %901 = vmax.xlane.f32.xlu0 %v900_v19 }
 0x61f   : > { %926 = vrot.lane.b32.xlu1 %v1639_v36, %s1497_s6 }
 0x627   : > { %928 = vrot.lane.b32.xlu0 %v1425_v39, %s1497_s6 }
 0x643   : > { %518 = vadd.xlane.f32.xlu1 %v517_v20 }
 0x646   : > { %521 = vadd.xlane.f32.xlu0 %v520_v23 }
 0x647   : > { %524 = vadd.xlane.f32.xlu1 %v523_v12 }
 0x64a   : > { %717 = vadd.xlane.f32.xlu0 %v716_v25 }
 0x64b   : > { %720 = vadd.xlane.f32.xlu1 %v719_v26 }
 0x64e   : > { %723 = vadd.xlane.f32.xlu0 %v722_v27 }
 0x69a   : > { %v905_v28 = vpop.xlane.xlu0 %904 }
 0x69b   : > { %v908_v14 = vsub.f32 %v892_v7, %v905_v28  ;;  %v899_v29 = vpop.xlane.xlu1 %898 }
 0x69c   : > { %v906_v30 = vsub.f32 %v884_v9, %v899_v29 }
 0x69d   : > { %v913_v31 = vmul.f32 1.442695, %v908_v14 }
 0x69e   : > { %v909_v13 = vmul.f32 1.442695, %v906_v30  ;;  %v902_v32 = vpop.xlane.xlu0 %901 }
 0x69f   : > { %v907_v33 = vsub.f32 %v887_v17, %v902_v32  ;;  %v927_v34 = vpop.permute.xlu1 %926 }
 0x6a0   : > { %1448 = vpow2.f32 %v909_v13  ;;  %1367 = vmatprep.subr.bf16.mxu0 %v927_v34  ;;  %v1427_v13 = vld [vmem:[%s1721_s1 + $0x8] sm:$0xff]  }
 0x6a1   : > { %v911_v11 = vmul.f32 1.442695, %v907_v33  ;;  %1368 = vmatpush3.bf16.msra.mxu0 %v927_v34  ;;  %1450 = vpow2.f32 %v913_v31 }
 0x6a2   : > { %v929_v36 = vpop.permute.xlu0 %928 }
 0x6a3   : > { %1452 = vpow2.f32 %v911_v11  ;;  %v938_v39 = vsel %vm345_vm1, %v929_v36, 0  ;;  %1394 = vmatprep.subr.msk.bf16.mxu0 %vm345_vm1, %v929_v36 }
 0x6a5   : > { %1370 = vmatpush3.bf16.msra.mxu0 %v938_v39 }
 0x6aa   : > { %v1449_v40 = vpop.eup %1448 }
 0x6ab   : > { %v915_v41 = vsel %vm304_vm3, %v1449_v40, 0.0  ;;  %v1451_v42 = vpop.eup %1450 }
 0x6ac   : > { %916 = vadd.xlane.f32.xlu1 %v915_v41  ;;  %v921_v48 = vsel %vm304_vm3, %v1451_v42, 0.0  ;;  %v925_v50 = vpack.c.bf16 %v1451_v42, %v1451_v42 }
 0x6ad   : > { %v1453_v43 = vpop.eup %1452 }
 0x6ae   : > { %v918_v44 = vsel %vm304_vm3, %v1453_v43, 0.0  ;;  %v924_v45 = vpack.c.bf16 %v1453_v43, %v1449_v40 }
 0x6af   : > { %919 = vadd.xlane.f32.xlu0 %v918_v44 }
 0x6b0   : > { %1371 = vmatprep.mubr.msk.bf16.mxu0 %vm304_vm3, %v924_v45  ;;  %922 = vadd.xlane.f32.xlu1 %v921_v48 }
 0x6b1   : > { %1372 = vmatmul.mubr.msk.bf16.vlgmr.msra.gmra.mrb[12].mxu0 %vm304_vm3, %v925_v50 }
 0x6b3   : > { %324 = vadd.xlane.f32.xlu0 %v323_v51 }
 0x6b4   : > { %327 = vadd.xlane.f32.xlu1 %v326_v52 }
 0x6b7   : > { %330 = vadd.xlane.f32.xlu0 %v329_v53 }
 0x6d0   : > { %v519_v54 = vpop.xlane.xlu1 %518 }
 0x6d1   : > { %1454 = vrcp.f32 %v519_v54 }
 0x6d3   : > { %v522_v55 = vpop.xlane.xlu0 %521 }
 0x6d4   : > { %1456 = vrcp.f32 %v522_v55  ;;  %v525_v56 = vpop.xlane.xlu1 %524  ;;  %v1108_v55 = vld [vmem:[%s215_s17 + $0x8] sm:$0xf] }
 0x6d5   : > { %1458 = vrcp.f32 %v525_v56  ;;  %v1272_v56 = vld [vmem:[%s215_s17] sm:$0xff]  }
 0x6d7   : > { %v718_v57 = vpop.xlane.xlu0 %717 }
 0x6d8   : > { %1460 = vrcp.f32 %v718_v57  ;;  %v721_v58 = vpop.xlane.xlu1 %720  ;;  %v1244_v57 = vld [vmem:[%s1722_s2] ss:$0 sm:$0xff] }
 0x6d9   : > { %1462 = vrcp.f32 %v721_v58  ;;  %v1111_v58 = vunpack.c.l.bf16 %v1108_v55 }
 0x6db   : > { %v1455_v37 = vpop.eup %1454  ;;  %v724_v59 = vpop.xlane.xlu0 %723 }
 0x6dc   : > { %1464 = vrcp.f32 %v724_v59  ;;  %v593_v38 = vmul.f32 %v1455_v37, %v1628_v22  ;;  %v1273_v59 = vunpack.c.l.bf16 %v1272_v56 }
 0x6de   : > { %v1457_v60 = vpop.eup %1456  ;;  %v1259_v61 = vpack.c.bf16 %v593_v38, %v593_v38 }
 0x6df   : > { %v1459_v62 = vpop.eup %1458  ;;  %v594_v35 = vmul.f32 %v1457_v60, %v1630_v24 }
 0x6e0   : > { %606 = vrot.lane.b32.xlu1 %v1259_v61, %s1498_s7  ;;  %v595_v63 = vmul.f32 %v1459_v62, %v1626_v21 }
 0x6e1   : > { %v1260_v0 = vpack.c.bf16 %v594_v35, %v594_v35  ;;  %v1274_v35 = vunpack.c.h.bf16 %v1272_v56 }
 0x6e2   : > { %v1461_v1 = vpop.eup %1460  ;;  %v1261_v4 = vpack.c.bf16 %v595_v63, %v595_v63 }
 0x6e3   : > { %v1463_v6 = vpop.eup %1462  ;;  %608 = vrot.lane.b32.xlu0 %v1260_v0, %s1498_s7  ;;  %v792_v7 = vmul.f32 %v1461_v1, %v1658_v3 }
 0x6e4   : > { %610 = vrot.lane.b32.xlu1 %v1261_v4, %s1498_s7  ;;  %v793_v8 = vmul.f32 %v1463_v6, %v1660_v5 }
 0x6e5   : > { %v1262_v22 = vpack.c.bf16 %v792_v7, %v792_v7 }
 0x6e6   : > { %v1465_v9 = vpop.eup %1464  ;;  %v1263_v10 = vpack.c.bf16 %v793_v8, %v793_v8 }
 0x6e7   : > { %v794_v15 = vmul.f32 %v1465_v9, %v1656_v2 }
 0x6e8   : > { %805 = vrot.lane.b32.xlu1 %v1262_v22, %s1499_s8  ;;  %807 = vrot.lane.b32.xlu0 %v1263_v10, %s1499_s8 }
 0x6e9   : > { %v1264_v24 = vpack.c.bf16 %v794_v15, %v794_v15 }
 0x6ec   : > { %809 = vrot.lane.b32.xlu1 %v1264_v24, %s1499_s8 }
 0x739   : > { %v917_v21 = vpop.xlane.xlu1 %916 }
 0x73c   : > { %v920_v16 = vpop.xlane.xlu0 %919 }
 0x73d   : > { %v923_v17 = vpop.xlane.xlu1 %922 }
 0x740   : > { %v325_v18 = vpop.xlane.xlu0 %324 }
 0x741   : > { %1466 = vrcp.f32 %v325_v18  ;;  %v328_v19 = vpop.xlane.xlu1 %327 }
 0x742   : > { %1468 = vrcp.f32 %v328_v19 }
 0x744   : > { %v331_v3 = vpop.xlane.xlu0 %330 }
 0x745   : > { %1470 = vrcp.f32 %v331_v3 }
 0x746   : > { %1472 = vrcp.f32 %v923_v17 }
 0x747   : > { %1474 = vrcp.f32 %v917_v21 }
 0x748   : > { %1476 = vrcp.f32 %v920_v16 }
 0x74b   : > { %v1467_v5 = vpop.eup %1466 }
 0x74c   : > { %v1469_v20 = vpop.eup %1468  ;;  %v400_v23 = vmul.f32 %v1467_v5, %v1587_v47 }
 0x74d   : > { %v401_v2 = vmul.f32 %v1469_v20, %v1589_v49 }
 0x74e   : > { %v1256_v12 = vpack.c.bf16 %v400_v23, %v400_v23 }
 0x74f   : > { %v1471_v25 = vpop.eup %1470  ;;  %v1257_v26 = vpack.c.bf16 %v401_v2, %v401_v2 }
 0x750   : > { %417 = vst.msk [vmem:[#allocation2] sm:$0xf] %vm416_vm4, %v1256_v12  ;;  %v402_v27 = vmul.f32 %v1471_v25, %v1585_v46  ;;  %v1426_v46 = vld [vmem:[%s1721_s1] sm:$0xff]   ;;  %v1473_v32 = vpop.eup %1472 }
 0x751   : > { %418 = vst.msk [vmem:[#allocation2 + $0x4] sm:$0xf] %vm416_vm4, %v1257_v26  ;;  %1375 = vmatprep.subr.bf16.mxu0 %v1426_v46  ;;  %v1475_v34 = vpop.eup %1474 }
 0x752   : > { %v607_v28 = vpop.permute.xlu1 %606  ;;  %v1258_v14 = vpack.c.bf16 %v402_v27, %v402_v27  ;;  %1376 = vmatpush3.bf16.msra.mxu0 %v1426_v46  ;;  %v1477_v41 = vpop.eup %1476 }
 0x753   : > { %616 = vst.msk [vmem:[#allocation2] sm:$0xf] %vm615_vm5, %v607_v28  ;;  %1377 = vmatprep.subr.bf16.mxu0 %v1427_v13 }
 0x754   : > { %419 = vst.msk [vmem:[#allocation2 + $0x8] sm:$0xf] %vm416_vm4, %v1258_v14 }
 0x755   : > { %v609_v29 = vpop.permute.xlu0 %608 }
 0x756   : > { %617 = vst.msk [vmem:[#allocation2 + $0x4] sm:$0xf] %vm615_vm5, %v609_v29  ;;  %v611_v30 = vpop.permute.xlu1 %610  ;;  %1378 = vmatpush3.bf16.msra.mxu0 %v1427_v13 }
 0x757   : > { %618 = vst.msk [vmem:[#allocation2 + $0x8] sm:$0xf] %vm615_vm5, %v611_v30 }
 0x75a   : > { %v808_v47 = vpop.permute.xlu0 %807  ;;  %v806_v31 = vpop.permute.xlu1 %805 }
 0x75b   : > { %816 = vst.msk [vmem:[#allocation2 + $0x4] sm:$0xf] %vm814_vm6, %v808_v47  ;;  %815 = vst.msk [vmem:[#allocation2] sm:$0xf] %vm814_vm6, %v806_v31 }
 0x75e   : > { %v810_v49 = vpop.permute.xlu1 %809 }
 0x75f   : > { %817 = vst.msk [vmem:[#allocation2 + $0x8] sm:$0xf] %vm814_vm6, %v810_v49 }
 0x784   : > { %v1373_v33 = vpop.f32.mrb[12].mxu0 }
 0x785   : > { %v993_v11 = vmul.f32 %v1473_v32, %v1373_v33  ;;  %v974_v36 = vpop.f32.mrb[13].mxu0 }
 0x786   : > { %v991_v39 = vmul.f32 %v1475_v34, %v974_v36  ;;  %v1374_v40 = vpop.f32.mrb[14].mxu0 }
 0x787   : > { %v977_v42 = vpop.f32.mrb[15].mxu0  ;;  %v1267_v48 = vpack.c.bf16 %v993_v11, %v993_v11 }
 0x788   : > { %v1265_v43 = vpack.c.bf16 %v991_v39, %v991_v39  ;;  %v992_v44 = vmul.f32 %v1477_v41, %v977_v42 }
 0x78a   : > { %v1266_v45 = vpack.c.bf16 %v992_v44, %v992_v44  ;;  %1004 = vrot.lane.b32.xlu0 %v1265_v43, %s1500_s13 }
 0x78c   : > { %1006 = vrot.lane.b32.xlu1 %v1266_v45, %s1500_s13 }
 0x78e   : > { %1008 = vrot.lane.b32.xlu0 %v1267_v48, %s1500_s13 }
 0x7fc   : > { %v1005_v50 = vpop.permute.xlu0 %1004 }
 0x7fd   : > { %1014 = vst.msk [vmem:[#allocation2] sm:$0xf] %vm1013_vm7, %v1005_v50 }
 0x7fe   : > { %v1007_v51 = vpop.permute.xlu1 %1006 }
 0x7ff   : > { %1015 = vst.msk [vmem:[#allocation2 + $0x4] sm:$0xf] %vm1013_vm7, %v1007_v51 }
 0x800   : > { %v1009_v52 = vpop.permute.xlu0 %1008 }
 0x801   : > { %1016 = vst.msk [vmem:[#allocation2 + $0x8] sm:$0xf] %vm1013_vm7, %v1009_v52 }
 0x806   : > { %v1428_v53 = vld [vmem:[#allocation2] sm:$0xff]  }
 0x807   : > { %1379 = vmatprep.mubr.msk.bf16.mxu0 %vm1051_vm8, %v1428_v53 }
 0x808   : > { %v1429_v54 = vld [vmem:[#allocation2 + $0x8] ss:$0 sps:$4 sm:$0xff]  }
 0x809   : > { %1380 = vmatmul.mubr.msk.bf16.vlgmr.msra.gmra.mrb[16].mxu0 %vm1051_vm8, %v1429_v54 }
 0x8dc   : > { %v1381_v37 = vpop.f32.mrb[16].mxu0 }
 0x8dd   : > { %v1101_v38 = vadd.f32 %v1381_v37, %v1244_v57  ;;  %v1092_v60 = vpop.f32.mrb[17].mxu0 }
 0x8de   : > { %v1093_v61 = vadd.f32 %v1244_v57, %v1092_v60  ;;  %v1382_v62 = vpop.f32.mrb[18].mxu0 }
 0x8df   : > { %v1114_v63 = vadd.f32 %v1111_v58, %v1101_v38  ;;  %v1095_v0 = vpop.f32.mrb[19].mxu0 }
 0x8e0   : > { %v1112_v1 = vadd.f32 %v1273_v59, %v1093_v61  ;;  %v1096_v4 = vadd.f32 %v1244_v57, %v1095_v0 }
 0x8e1   : > { %v1270_v6 = vpack.c.bf16 %v1114_v63, %v1114_v63 }
 0x8e2   : > { %v1268_v7 = vpack.c.bf16 %v1112_v1, %v1112_v1  ;;  %v1113_v8 = vadd.f32 %v1274_v35, %v1096_v4 }
 0x8e3   : > { %1131 = vst.msk [vmem:[%s221_s23 + $0x8] sm:$0xf] %vm1128_vm9, %v1270_v6 }
 0x8e4   : > { %1129 = vst.msk [vmem:[%s221_s23] sm:$0xf] %vm1128_vm9, %v1268_v7  ;;  %v1269_v22 = vpack.c.bf16 %v1113_v8, %v1113_v8 }
 0x8e6   : > { %1130 = vst.msk [vmem:[%s221_s23 + $0x4] sm:$0xf] %vm1128_vm9, %v1269_v22 }
 0x8e7 PF: > { %s14_s15 = sadd.s32 1, %s1484_s15  }
 0x8e8   : > { %p11_p4 = scmp.ge.s32.totalorder %s14_s15, 4  }
 0x8ea   :  { %13 = sbr.rel (!%p11_p4) target bundleno = 1 (0x1), region = 69 }

// kernel: vit_forward.19
= control target key start
LH: loop header
LB: loop body
LE: loop exit
PB: predicated region body
PF: predicated region fallthrough
CT: control target
= control target key end

     0   :  { %vm28_vm0 = vcmask 254976   ;;  %s257_s0 = inlined_call_operand.vmem [shape: bf16[2,32], index: 0, kind: input, shape index: {}]   ;;  %s258_s1 = inlined_call_operand.vmem [shape: f32[1,32], index: 1, kind: input, shape index: {}]   ;;  %s259_s2 = inlined_call_operand.vmem [shape: f32[1,32], index: 2, kind: input, shape index: {}]   ;;  %s260_s3 = inlined_call_operand.vmem [shape: bf16[32,10], index: 3, kind: input, shape index: {}]   ;;  %s261_s4 = inlined_call_operand.vmem [shape: f32[1,10], index: 4, kind: input, shape index: {}]   ;;  %s262_s5 = inlined_call_operand.hbm [shape: f32[2,10], index: 5, kind: output, shape index: {}]  }
   0x1   :  { %v26_v0 = vld [vmem:[%s257_s0] sm:$0x1] }
   0x2   :  { %v27_v1 = vunpack.c.l.bf16 %v26_v0 }
   0x3   :  { %10 = vsyncpa [#allocation4], 0  ;;  %v166_v8 = vld [vmem:[%s260_s3] sm:$0xff]   ;;  %v194_v9 = vmov 0.0   ;;  %v167_v10 = vld [vmem:[%s260_s3 + $0x8] sm:$0xff]   ;;  %vm195_vm1 = vmmov 0  }
   0x4   :  { %v29_v2 = vsel %vm28_vm0, %v27_v1, 0.0  ;;  %155 = vmatprep.subr.bf16.mxu0 %v194_v9  ;;  %159 = vmatprep.mubr.msk.bf16.mxu0 %vm195_vm1, %v194_v9  ;;  %v146_v15 = vld [vmem:[%s258_s1] ss:$0 sm:$0xff]  ;;  %vm60_vm2 = vcmask 253952   ;;  %vm86_vm3 = vcmask 261120   ;;  %s196_s28 = smov [#allocation3]  }
   0x5   :  { %30 = vadd.xlane.f32.xlu0 %v29_v2  ;;  %156 = vmatpush3.bf16.msra.mxu0 %v166_v8  ;;  %v147_v17 = vld [vmem:[%s259_s2] ss:$0 sm:$0xff]  ;;  %s138_s29 = sshll.u32 %s196_s28, 4  ;;  %vm130_vm4 = vcmask 74752   ;;  %s139_s29 = int_to_ptr.vmem [resolvable:$true] %s138_s29 }
   0x6   :  { %157 = vmatprep.subr.bf16.mxu0 %v194_v9  ;;  %v148_v22 = vld [vmem:[%s261_s4] ss:$0 sm:$0xff]  ;;  %s170_s1 = scalar_lea.vmem %s139_s29, 32  ;;  %p175_p1 = scmp.lt.s32.totalorder %s139_s29, %s139_s29 }
   0x7   :  { %p171_p0 = scmp.ne.s32.totalorder %s139_s29, %s170_s1  ;;  %p176_p2 = scmp.lt.s32.totalorder %s170_s1, %s170_s1 }
   0x9   :  { %158 = vmatpush3.bf16.msra.mxu0 %v167_v10  ;;  %p177_p3 = por %p176_p2, %p175_p1 }
   0xb   :  { %p178_p4 = pnand %p177_p3, %p171_p0 }
  0x92   :  { %v31_v3 = vpop.xlane.xlu0 %30 }
  0x93   :  { %v33_v4 = vmul.f32 0.03125, %v31_v3 }
  0x95   :  { %v34_v5 = vsub.f32 %v27_v1, %v33_v4 }
  0x97   :  { %v35_v6 = vmul.f32 %v34_v5, %v34_v5 }
  0x99   :  { %v36_v7 = vsel %vm28_vm0, %v35_v6, 0.0 }
  0x9a   :  { %37 = vadd.xlane.f32.xlu0 %v36_v7 }
 0x127   :  { %v38_v11 = vpop.xlane.xlu0 %37 }
 0x128   :  { %v39_v12 = vmul.f32 0.03125, %v38_v11 }
 0x12a   :  { %v40_v13 = vadd.f32 1e-06, %v39_v12 }
 0x12c   :  { %168 = vrsqrt.f32 %v40_v13 }
 0x136   :  { %v169_v14 = vpop.eup %168 }
 0x137   :  { %v42_v16 = vmul.f32 %v169_v14, %v34_v5 }
 0x139   :  { %v50_v18 = vmul.f32 %v146_v15, %v42_v16 }
 0x13b   :  { %v58_v19 = vadd.f32 %v147_v17, %v50_v18 }
 0x13d   :  { %v59_v20 = vpack.c.bf16 %v58_v19, %v58_v19 }
 0x13f   :  { %61 = vst.msk [vmem:[#allocation2] sm:$0x1] %vm60_vm2, %v59_v20 }
 0x146   :  { %v62_v21 = vld [vmem:[#allocation2] sm:$0x1] }
 0x147   :  { %160 = vmatmul.mubr.msk.bf16.vlgmr.msra.gmra.mrb[0].mxu0 %vm86_vm3, %v62_v21 }
 0x21a   :  { %v124_v23 = vpop.f32.mrb[0].mxu0 }
 0x21b   :  { %v125_v24 = vadd.f32 %v148_v22, %v124_v23  ;;  %v161_v25 = vpop.f32.mrb[1].mxu0 }
 0x21c   :  { %v127_v26 = vpop.f32.mrb[2].mxu0 }
 0x21d   :  { %v162_v27 = vpop.f32.mrb[3].mxu0  ;;  %131 = vst.msk [vmem:[#allocation3] sm:$0x3] %vm130_vm4, %v125_v24 }
 0x21e   :  { %181 = shalt.err (!%p178_p4)
}
 0x21f   :  { %s182_s4 = scalar_lea.hbm %s262_s5, 32 }
 0x220   :  { %p183_p5 = scmp.ne.s32.totalorder %s262_s5, %s182_s4  ;;  %p186_p6 = scmp.lt.u32.totalorder %s182_s4, %s262_s5 }
 0x222   :  { %p188_p7 = pnand %p186_p6, %p183_p5 }
 0x224   :  { %191 = shalt.err (!%p188_p7)
}
 0x225   :  { %141 = dma.vmem_to_hbm [thread:$0]  %s139_s29, 32, %s262_s5, [#allocation4]  }
 0x226   :  { %192 = dma.done.wait [#allocation4], 32  }
 0x227   :  { %193 = vsyncadd [#allocation4], 4294967264 }
 0x228   :  { %145 = vsyncpa [#allocation4], 1 }

// kernel: vit_forward.14
= control target key start
LH: loop header
LB: loop body
LE: loop exit
PB: predicated region body
PF: predicated region fallthrough
CT: control target
= control target key end

     0   :  { %vm22_vm0 = vcmask 261120   ;;  %v374_v0 = vmov 0.0   ;;  %vm375_vm1 = vmmov 0   ;;  %vm257_vm2 = vcmask 257024   ;;  %s485_s1 = inlined_call_operand.vmem [shape: bf16[128,32], index: 1, kind: input, shape index: {}]   ;;  %s486_s0 = inlined_call_operand.vmem [shape: bf16[48,128], index: 0, kind: input, shape index: {}]   ;;  %s487_s3 = inlined_call_operand.vmem [shape: bf16[48,32], index: 3, kind: input, shape index: {}]   ;;  %s488_s2 = inlined_call_operand.vmem [shape: f32[1,32], index: 2, kind: input, shape index: {}]   ;;  %s489_s4 = inlined_call_operand.vmem [shape: bf16[48,32], index: 4, kind: output, shape index: {}]  }
   0x1   :  { %345 = vmatprep.subr.bf16.mxu1 %v374_v0  ;;  %v363_v1 = vld [vmem:[%s485_s1] sm:$0xff]   ;;  %317 = vmatprep.subr.bf16.mxu0 %v374_v0  ;;  %25 = vst.msk [vmem:[#allocation2 + $0x10] sm:$0xff] %vm22_vm0, %v374_v0  ;;  %23 = vst.msk [vmem:[#allocation2] sm:$0xff] %vm22_vm0, %v374_v0  ;;  %v364_v2 = vld [vmem:[%s485_s1 + $0x8] sm:$0xff]  }
   0x2   :  { %24 = vst.msk [vmem:[#allocation2 + $0x8] sm:$0xff] %vm22_vm0, %v374_v0  ;;  %26 = vst.msk [vmem:[#allocation2 + $0x18] sm:$0xff] %vm22_vm0, %v374_v0  ;;  %337 = vmatprep.mubr.msk.bf16.mxu1 %vm375_vm1, %v374_v0  ;;  %333 = vmatprep.mubr.msk.bf16.mxu0 %vm375_vm1, %v374_v0  ;;  %v365_v3 = vld [vmem:[%s485_s1 + $0x10] sm:$0xff]   ;;  %v366_v4 = vld [vmem:[%s485_s1 + $0x18] sm:$0xff]  }
   0x3   :  { %27 = vst.msk [vmem:[#allocation2 + $0x20] sm:$0xff] %vm22_vm0, %v374_v0  ;;  %28 = vst.msk [vmem:[#allocation2 + $0x28] sm:$0xff] %vm22_vm0, %v374_v0  ;;  %353 = vmatpush3.bf16.msra.mxu1 %v363_v1  ;;  %318 = vmatpush3.bf16.msra.mxu0 %v363_v1  ;;  %v367_v5 = vld [vmem:[%s485_s1 + $0x20] sm:$0xff]   ;;  %v368_v6 = vld [vmem:[%s485_s1 + $0x28] sm:$0xff]  }
   0x4   :  { %346 = vmatprep.subr.bf16.mxu1 %v374_v0  ;;  %319 = vmatprep.subr.bf16.mxu0 %v374_v0  ;;  %v369_v7 = vld [vmem:[%s485_s1 + $0x30] sm:$0xff]   ;;  %v370_v8 = vld [vmem:[%s485_s1 + $0x38] sm:$0xff]   ;;  %v371_v9 = vld [vmem:[%s486_s0 + $0x8] sm:$0xff]  }
   0x5   :  { %v372_v10 = vld [vmem:[%s486_s0] sm:$0xff]   ;;  %v373_v11 = vld [vmem:[%s486_s0 + $0x10] sm:$0xff]   ;;  %v304_v28 = vld [vmem:[%s487_s3 + $0x8] sm:$0xff]  }
   0x6   :  { %v293_v29 = vld [vmem:[%s487_s3] sm:$0xff]   ;;  %v298_v34 = vunpack.c.l.bf16 %v304_v28  ;;  %v299_v39 = vunpack.c.h.bf16 %v304_v28  ;;  %v305_v53 = vld [vmem:[%s487_s3 + $0x10] sm:$0xff]  }
   0x7   :  { %354 = vmatpush3.bf16.msra.mxu1 %v364_v2  ;;  %320 = vmatpush3.bf16.msra.mxu0 %v364_v2  ;;  %v279_v31 = vld [vmem:[%s488_s2] ss:$0 sm:$0xff]  ;;  %v294_v35 = vunpack.c.l.bf16 %v293_v29  ;;  %v295_v44 = vunpack.c.h.bf16 %v293_v29  ;;  %v302_v60 = vunpack.c.l.bf16 %v305_v53  ;;  %v303_v63 = vunpack.c.h.bf16 %v305_v53 }
   0x8   :  { %347 = vmatprep.subr.bf16.mxu1 %v374_v0  ;;  %321 = vmatprep.subr.bf16.mxu0 %v374_v0  ;;  %v31_v12 = vld [vmem:[#allocation2 + $0x10] sm:$0xff]  ;;  %v29_v13 = vld [vmem:[#allocation2] sm:$0xff] }
   0x9   :  { %v32_v15 = vld [vmem:[#allocation2 + $0x18] sm:$0xff]  ;;  %v30_v17 = vld [vmem:[#allocation2 + $0x8] sm:$0xff] }
   0xa   :  { %v33_v30 = vld [vmem:[#allocation2 + $0x20] sm:$0xff]  ;;  %v34_v33 = vld [vmem:[#allocation2 + $0x28] sm:$0xff] }
   0xb   :  { %355 = vmatpush3.bf16.msra.mxu1 %v365_v3  ;;  %322 = vmatpush3.bf16.msra.mxu0 %v365_v3 }
   0xc   :  { %348 = vmatprep.subr.bf16.mxu1 %v374_v0  ;;  %323 = vmatprep.subr.bf16.mxu0 %v374_v0 }
   0xf   :  { %356 = vmatpush3.bf16.msra.mxu1 %v366_v4  ;;  %324 = vmatpush3.bf16.msra.mxu0 %v366_v4 }
  0x10   :  { %349 = vmatprep.subr.bf16.mxu1 %v374_v0  ;;  %325 = vmatprep.subr.bf16.mxu0 %v374_v0 }
  0x13   :  { %357 = vmatpush3.bf16.msra.mxu1 %v367_v5  ;;  %326 = vmatpush3.bf16.msra.mxu0 %v367_v5 }
  0x14   :  { %350 = vmatprep.subr.bf16.mxu1 %v374_v0  ;;  %327 = vmatprep.subr.bf16.mxu0 %v374_v0 }
  0x17   :  { %358 = vmatpush3.bf16.msra.mxu1 %v368_v6  ;;  %328 = vmatpush3.bf16.msra.mxu0 %v368_v6 }
  0x18   :  { %351 = vmatprep.subr.bf16.mxu1 %v374_v0  ;;  %329 = vmatprep.subr.bf16.mxu0 %v374_v0 }
  0x1b   :  { %359 = vmatpush3.bf16.msra.mxu1 %v369_v7  ;;  %330 = vmatpush3.bf16.msra.mxu0 %v369_v7 }
  0x1c   :  { %352 = vmatprep.subr.bf16.mxu1 %v374_v0  ;;  %331 = vmatprep.subr.bf16.mxu0 %v374_v0 }
  0x1f   :  { %360 = vmatpush3.bf16.msra.mxu1 %v370_v8  ;;  %332 = vmatpush3.bf16.msra.mxu0 %v370_v8 }
  0x22   :  { %338 = vmatmul.mubr.bf16.vlgmr.msra.gmra.mrb[0].mxu1 %v371_v9  ;;  %334 = vmatmul.mubr.bf16.vlgmr.msra.gmra.mrb[0].mxu0 %v372_v10 }
  0x23   :  { %341 = vmatprep.mubr.msk.bf16.mxu1 %vm375_vm1, %v374_v0 }
  0x2a   :  { %342 = vmatmul.mubr.bf16.gmra.mrb[4].mxu1 %v373_v11 }
  0xf5   :  { %v165_v14 = vpop.f32.mrb[0].mxu1  ;;  %v157_v16 = vpop.f32.mrb[0].mxu0 }
  0xf6   :  { %v182_v18 = vadd.f32 %v165_v14, %v31_v12  ;;  %v339_v19 = vpop.f32.mrb[1].mxu1  ;;  %v180_v20 = vadd.f32 %v157_v16, %v29_v13  ;;  %v335_v21 = vpop.f32.mrb[1].mxu0 }
  0xf7   :  { %v168_v22 = vpop.f32.mrb[2].mxu1  ;;  %v160_v23 = vpop.f32.mrb[2].mxu0 }
  0xf8   :  { %189 = vst.msk [vmem:[#allocation2 + $0x10] sm:$0xff] %vm22_vm0, %v182_v18  ;;  %v183_v24 = vadd.f32 %v168_v22, %v32_v15  ;;  %v340_v25 = vpop.f32.mrb[3].mxu1  ;;  %187 = vst.msk [vmem:[#allocation2] sm:$0xff] %vm22_vm0, %v180_v20  ;;  %v181_v26 = vadd.f32 %v160_v23, %v30_v17  ;;  %v336_v27 = vpop.f32.mrb[3].mxu0 }
  0xfa   :  { %190 = vst.msk [vmem:[#allocation2 + $0x18] sm:$0xff] %vm22_vm0, %v183_v24  ;;  %188 = vst.msk [vmem:[#allocation2 + $0x8] sm:$0xff] %vm22_vm0, %v181_v26 }
  0xfd   :  { %v173_v32 = vpop.f32.mrb[4].mxu1 }
  0xfe   :  { %v184_v36 = vadd.f32 %v173_v32, %v33_v30  ;;  %v343_v37 = vpop.f32.mrb[5].mxu1 }
  0xff   :  { %v198_v38 = vld [vmem:[#allocation2 + $0x10] sm:$0xff]  ;;  %v196_v40 = vld [vmem:[#allocation2] sm:$0xff]  ;;  %v176_v41 = vpop.f32.mrb[6].mxu1 }
 0x100   :  { %v211_v42 = vadd.f32 %v279_v31, %v198_v38  ;;  %v209_v43 = vadd.f32 %v279_v31, %v196_v40  ;;  %191 = vst.msk [vmem:[#allocation2 + $0x20] sm:$0xff] %vm22_vm0, %v184_v36  ;;  %v185_v45 = vadd.f32 %v176_v41, %v34_v33  ;;  %v344_v46 = vpop.f32.mrb[7].mxu1 }
 0x101   :  { %v199_v47 = vld [vmem:[#allocation2 + $0x18] sm:$0xff]  ;;  %v197_v48 = vld [vmem:[#allocation2 + $0x8] sm:$0xff] }
 0x102   :  { %v229_v49 = vadd.f32 %v298_v34, %v211_v42  ;;  %v212_v50 = vadd.f32 %v279_v31, %v199_v47  ;;  %v227_v51 = vadd.f32 %v294_v35, %v209_v43  ;;  %v210_v52 = vadd.f32 %v279_v31, %v197_v48  ;;  %192 = vst.msk [vmem:[#allocation2 + $0x28] sm:$0xff] %vm22_vm0, %v185_v45 }
 0x104   :  { %v288_v54 = vpack.c.bf16 %v229_v49, %v229_v49  ;;  %v230_v55 = vadd.f32 %v299_v39, %v212_v50  ;;  %v286_v56 = vpack.c.bf16 %v227_v51, %v227_v51  ;;  %v228_v57 = vadd.f32 %v295_v44, %v210_v52 }
 0x106   :  { %260 = vst.msk [vmem:[%s489_s4 + $0x8] sm:$0xf] %vm257_vm2, %v288_v54  ;;  %v289_v58 = vpack.c.bf16 %v230_v55, %v230_v55  ;;  %258 = vst.msk [vmem:[%s489_s4] sm:$0xf] %vm257_vm2, %v286_v56  ;;  %v287_v59 = vpack.c.bf16 %v228_v57, %v228_v57 }
 0x107   :  { %v200_v61 = vld [vmem:[#allocation2 + $0x20] sm:$0xff] }
 0x108   :  { %261 = vst.msk [vmem:[%s489_s4 + $0xc] sm:$0xf] %vm257_vm2, %v289_v58  ;;  %259 = vst.msk [vmem:[%s489_s4 + $0x4] sm:$0xf] %vm257_vm2, %v287_v59  ;;  %v213_v62 = vadd.f32 %v279_v31, %v200_v61 }
 0x109   :  { %v201_v0 = vld [vmem:[#allocation2 + $0x28] sm:$0xff] }
 0x10a   :  { %v231_v1 = vadd.f32 %v302_v60, %v213_v62  ;;  %v214_v2 = vadd.f32 %v279_v31, %v201_v0 }
 0x10c   :  { %v290_v3 = vpack.c.bf16 %v231_v1, %v231_v1  ;;  %v232_v4 = vadd.f32 %v303_v63, %v214_v2 }
 0x10e   :  { %262 = vst.msk [vmem:[%s489_s4 + $0x10] sm:$0xf] %vm257_vm2, %v290_v3  ;;  %v291_v5 = vpack.c.bf16 %v232_v4, %v232_v4 }
 0x110   :  { %263 = vst.msk [vmem:[%s489_s4 + $0x14] sm:$0xf] %vm257_vm2, %v291_v5 }

</bundles_post_ra>
